<compile_context>
chip_gen: v6e
topology: v6e:2x2x1
jax: 0.10.0
libtpu: 0.0.40
codegen_flags: <defaults>
</compile_context>

<pallas_src>
import functools

import jax
import jax.numpy as jnp
from jax.experimental import pallas as pl
from jax.experimental.pallas import tpu as pltpu

CHANNELS = 3
IMG_SIZE = 64
IN_DIM = CHANNELS * IMG_SIZE * IMG_SIZE   # 12288
H1 = 512
H2 = 256
OUT_DIM = 1


def _leaky_relu(x, slope=0.2):
    return jnp.where(x > 0, x, slope * x)


def _disc_kernel(x_ref, w1_ref, b1_ref, w2_ref, b2_ref, w3t_ref, b3_ref,
                 out_ref, acc_ref):
    """Fused MLP discriminator.

    Grid = (batch tiles, K tiles).  Axis 0 ("parallel") tiles the batch,
    axis 1 ("arbitrary", last) tiles the K=12288 reduction of the first
    Linear.  Partial layer-1 products accumulate in a f32 VMEM scratch; on
    the last K step the small layer-2/3 epilogue runs and the (tb, 1)
    validity tile is written out.
    """
    k = pl.program_id(1)

    @pl.when(k == 0)
    def _():
        acc_ref[...] = jnp.zeros_like(acc_ref)

    # Layer 1 partial matmul: bf16 (tb, tk) @ bf16 (tk, 512) -> f32 acc.
    acc_ref[...] += jnp.dot(x_ref[...], w1_ref[...],
                            preferred_element_type=jnp.float32)

    @pl.when(k == pl.num_programs(1) - 1)
    def _():
        h1 = _leaky_relu(acc_ref[...] + b1_ref[...])                # (tb, 512)
        h2 = jnp.dot(h1, w2_ref[...],
                     preferred_element_type=jnp.float32) + b2_ref[...]
        h2 = _leaky_relu(h2)                                        # (tb, 256)
        # Layer 3 as VPU multiply + lane reduce instead of an N=1 MXU matmul.
        out = jnp.sum(h2 * w3t_ref[...], axis=-1, keepdims=True) + b3_ref[...]
        out_ref[...] = out.astype(out_ref.dtype)                    # (tb, 1)


def _pick_tb(B):
    """Batch tile: multiple of 8 (f32 sublanes) when possible, capped at 128
    so the epilogue temporaries stay small; otherwise use the full batch."""
    for cand in (128, 64, 32, 16, 8):
        if B % cand == 0:
            return cand
    return B


@functools.partial(jax.jit, static_argnames=("tk", "tb"))
def discriminator_forward(img, params, tk=2048, tb=None):
    """img: (B, C, H, W) float32, NCHW like PyTorch."""
    w1, b1, w2, b2, w3, b3 = params
    B = img.shape[0]
    x = img.reshape(B, -1)                                          # (B, 12288)
    K = x.shape[1]
    assert K % tk == 0 and tk % 128 == 0

    if tb is None:
        tb = _pick_tb(B)
    assert B % tb == 0

    # bf16 streaming of the bandwidth-dominant operands; f32 accumulation.
    x_bf = x.astype(jnp.bfloat16)
    w1_bf = w1.astype(jnp.bfloat16)
    w3t = w3.T                                                      # (1, 256)

    grid = (B // tb, K // tk)

    cost = pl.CostEstimate(
        flops=2 * B * (IN_DIM * H1 + H1 * H2 + H2 * OUT_DIM),
        transcendentals=0,
        bytes_accessed=(B * IN_DIM * 2 + IN_DIM * H1 * 2
                        + (H1 * H2 + H1 + H2 + H2 + OUT_DIM) * 4
                        + B * OUT_DIM * 4),
    )

    out = pl.pallas_call(
        _disc_kernel,
        out_shape=jax.ShapeDtypeStruct((B, OUT_DIM), jnp.float32),
        grid_spec=pltpu.PrefetchScalarGridSpec(
            num_scalar_prefetch=0,
            grid=grid,
            in_specs=[
                pl.BlockSpec((tb, tk), lambda b, k: (b, k)),        # x tile
                pl.BlockSpec((tk, H1), lambda b, k: (k, 0)),        # W1 K-tile
                pl.BlockSpec((1, H1), lambda b, k: (0, 0)),         # b1
                pl.BlockSpec((H1, H2), lambda b, k: (0, 0)),        # W2 (full)
                pl.BlockSpec((1, H2), lambda b, k: (0, 0)),         # b2
                pl.BlockSpec((1, H2), lambda b, k: (0, 0)),         # W3^T
                pl.BlockSpec((1, OUT_DIM), lambda b, k: (0, 0)),    # b3
            ],
            out_specs=pl.BlockSpec((tb, OUT_DIM), lambda b, k: (b, 0)),
            scratch_shapes=[pltpu.VMEM((tb, H1), jnp.float32)],
        ),
        compiler_params=pltpu.CompilerParams(
            dimension_semantics=("parallel", "arbitrary"),
            vmem_limit_bytes=32 * 1024 * 1024),
        cost_estimate=cost,
    )(x_bf, w1_bf, b1, w2, b2, w3t, b3)
    return out


def init_params(key):
    """Deterministic params mimicking nn.Linear's U(-1/sqrt(in), 1/sqrt(in))."""
    ks = jax.random.split(key, 6)

    def lin(kw, kb, fan_in, fan_out):
        bound = 1.0 / jnp.sqrt(fan_in)
        w = jax.random.uniform(kw, (fan_in, fan_out), jnp.float32,
                               -bound, bound)
        b = jax.random.uniform(kb, (1, fan_out), jnp.float32, -bound, bound)
        return w, b

    w1, b1 = lin(ks[0], ks[1], IN_DIM, H1)
    w2, b2 = lin(ks[2], ks[3], H1, H2)
    w3, b3 = lin(ks[4], ks[5], H2, OUT_DIM)
    return (w1, b1, w2, b2, w3, b3)


def reference_forward_f32(img, params):
    """Plain-JAX f32 reference (module semantics)."""
    w1, b1, w2, b2, w3, b3 = params
    x = img.reshape(img.shape[0], -1)
    h = _leaky_relu(x @ w1 + b1)
    h = _leaky_relu(h @ w2 + b2)
    return h @ w3 + b3


def reference_forward_matched(img, params):
    """Reference with the same bf16 streaming / f32 accumulation as the kernel."""
    w1, b1, w2, b2, w3, b3 = params
    x = img.reshape(img.shape[0], -1).astype(jnp.bfloat16)
    h = jnp.dot(x, w1.astype(jnp.bfloat16),
                preferred_element_type=jnp.float32) + b1
    h = _leaky_relu(h)
    h = _leaky_relu(jnp.dot(h, w2, preferred_element_type=jnp.float32) + b2)
    return jnp.dot(h, w3, preferred_element_type=jnp.float32) + b3


if __name__ == "__main__":
    key = jax.random.PRNGKey(0)
    k_img, k_par = jax.random.split(key)
    params = init_params(k_par)

    # Small demo batch (single batch tile).
    batch = 2
    img = jax.random.normal(k_img, (batch, CHANNELS, IMG_SIZE, IMG_SIZE),
                            jnp.float32)
    out = jax.block_until_ready(discriminator_forward(img, params))

    assert out.shape == (batch, 1), out.shape
    ref_m = reference_forward_matched(img, params)
    ref_f = reference_forward_f32(img, params)
    assert jnp.allclose(out, ref_m, atol=5e-3, rtol=5e-3), (out, ref_m)
    assert jnp.allclose(out, ref_f, atol=3e-2, rtol=3e-2), (out, ref_f)

    # Exercise the multi-batch-tile ("parallel" axis) path as well.
    batch2 = 16
    img2 = jax.random.normal(k_img, (batch2, CHANNELS, IMG_SIZE, IMG_SIZE),
                             jnp.float32)
    out2 = jax.block_until_ready(discriminator_forward(img2, params, tb=8))
    ref2 = reference_forward_matched(img2, params)
    assert out2.shape == (batch2, 1), out2.shape
    assert jnp.allclose(out2, ref2, atol=5e-3, rtol=5e-3), (out2, ref2)

    print("KERNEL_OK")
</pallas_src>

<mosaic_0001>
module attributes {stable_mosaic.version = 11 : i64} {
  func.func @_disc_kernel(%arg0: i32, %arg1: i32, %arg2: memref<2x2048xbf16, #tpu.memory_space<vmem>>, %arg3: memref<2048x512xbf16, #tpu.memory_space<vmem>>, %arg4: memref<1x512xf32, #tpu.memory_space<vmem>>, %arg5: memref<512x256xf32, #tpu.memory_space<vmem>>, %arg6: memref<1x256xf32, #tpu.memory_space<vmem>>, %arg7: memref<1x256xf32, #tpu.memory_space<vmem>>, %arg8: memref<1x1xf32, #tpu.memory_space<vmem>>, %arg9: memref<2x1xf32, #tpu.memory_space<vmem>>, %arg10: memref<2x512xf32, #tpu.memory_space<vmem>>) attributes {dimension_semantics = [#tpu.dimension_semantics<parallel>, #tpu.dimension_semantics<arbitrary>], iteration_bounds = array<i64: 1, 6>, scalar_prefetch = 0 : i64, scratch_operands = 1 : i64, tpu.core_type = #tpu.core_type<tc>, window_params = [{transform_indices = @transform_0, window_bounds = array<i64: 2, 2048>}, {transform_indices = @transform_1, window_bounds = array<i64: 2048, 512>}, {pipeline_mode = #tpu.pipeline_mode<synchronous>, transform_indices = @transform_2, window_bounds = array<i64: 1, 512>}, {pipeline_mode = #tpu.pipeline_mode<synchronous>, transform_indices = @transform_3, window_bounds = array<i64: 512, 256>}, {pipeline_mode = #tpu.pipeline_mode<synchronous>, transform_indices = @transform_4, window_bounds = array<i64: 1, 256>}, {pipeline_mode = #tpu.pipeline_mode<synchronous>, transform_indices = @transform_5, window_bounds = array<i64: 1, 256>}, {pipeline_mode = #tpu.pipeline_mode<synchronous>, transform_indices = @transform_6, window_bounds = array<i64: 1, 1>}, {transform_indices = @transform_7, window_bounds = array<i64: 2, 1>}]} {
    %c0_i32 = arith.constant 0 : i32
    %0 = arith.cmpi eq, %arg1, %c0_i32 : i32
    %1 = arith.extui %0 : i1 to i32
    %c0_i32_0 = arith.constant 0 : i32
    %2 = arith.cmpi ne, %1, %c0_i32_0 : i32
    scf.if %2 {
      %cst_9 = arith.constant 0.000000e+00 : f32
      %12 = vector.broadcast %cst_9 : f32 to vector<2x512xf32>
      %c0_10 = arith.constant 0 : index
      %c0_11 = arith.constant 0 : index
      %13 = vector.load %arg10[%c0_10, %c0_11] : memref<2x512xf32, #tpu.memory_space<vmem>>, vector<2x512xf32>
      tpu.vector_store %arg10[%c0_10, %c0_11], %12 {strides = array<i32>} : memref<2x512xf32, #tpu.memory_space<vmem>>, vector<2x512xf32>,
    } else {
    }
    %c0 = arith.constant 0 : index
    %c0_1 = arith.constant 0 : index
    %3 = vector.load %arg10[%c0, %c0_1] : memref<2x512xf32, #tpu.memory_space<vmem>>, vector<2x512xf32>
    %c0_2 = arith.constant 0 : index
    %c0_3 = arith.constant 0 : index
    %4 = vector.load %arg2[%c0_2, %c0_3] : memref<2x2048xbf16, #tpu.memory_space<vmem>>, vector<2x2048xbf16>
    %c0_4 = arith.constant 0 : index
    %c0_5 = arith.constant 0 : index
    %5 = vector.load %arg3[%c0_4, %c0_5] : memref<2048x512xbf16, #tpu.memory_space<vmem>>, vector<2048x512xbf16>
    %cst = arith.constant dense<0.000000e+00> : vector<2x512xf32>
    %6 = tpu.matmul %4, %5, %cst {dimension_numbers = #tpu.dot_dimension_numbers<[1], [0], [0], [1], [0, 0, 1, 1], [], []>} : vector<2x2048xbf16>, vector<2048x512xbf16>, vector<2x512xf32> -> vector<2x512xf32>
    %7 = arith.addf %3, %6 : vector<2x512xf32>
    %c0_6 = arith.constant 0 : index
    %c0_7 = arith.constant 0 : index
    %8 = vector.load %arg10[%c0_6, %c0_7] : memref<2x512xf32, #tpu.memory_space<vmem>>, vector<2x512xf32>
    tpu.vector_store %arg10[%c0_6, %c0_7], %7 {strides = array<i32>} : memref<2x512xf32, #tpu.memory_space<vmem>>, vector<2x512xf32>,
    %c5_i32 = arith.constant 5 : i32
    %9 = arith.cmpi eq, %arg1, %c5_i32 : i32
    %10 = arith.extui %9 : i1 to i32
    %c0_i32_8 = arith.constant 0 : i32
    %11 = arith.cmpi ne, %10, %c0_i32_8 : i32
    scf.if %11 {
      %c0_9 = arith.constant 0 : index
      %c0_10 = arith.constant 0 : index
      %12 = vector.load %arg10[%c0_9, %c0_10] : memref<2x512xf32, #tpu.memory_space<vmem>>, vector<2x512xf32>
      %c0_11 = arith.constant 0 : index
      %c0_12 = arith.constant 0 : index
      %13 = vector.load %arg4[%c0_11, %c0_12] : memref<1x512xf32, #tpu.memory_space<vmem>>, vector<1x512xf32>
      %14 = vector.broadcast %13 : vector<1x512xf32> to vector<2x512xf32>
      %15 = arith.addf %12, %14 : vector<2x512xf32>
      %cst_13 = arith.constant 0.000000e+00 : f32
      %16 = vector.broadcast %cst_13 : f32 to vector<2x512xf32>
      %17 = arith.cmpf ogt, %15, %16 : vector<2x512xf32>
      %cst_14 = arith.constant 2.000000e-01 : f32
      %18 = vector.broadcast %cst_14 : f32 to vector<2x512xf32>
      %19 = arith.mulf %18, %15 : vector<2x512xf32>
      %20 = arith.select %17, %15, %19 : vector<2x512xi1>, vector<2x512xf32>
      %c0_15 = arith.constant 0 : index
      %c0_16 = arith.constant 0 : index
      %21 = vector.load %arg5[%c0_15, %c0_16] : memref<512x256xf32, #tpu.memory_space<vmem>>, vector<512x256xf32>
      %cst_17 = arith.constant dense<0.000000e+00> : vector<2x256xf32>
      %22 = tpu.matmul %20, %21, %cst_17 {dimension_numbers = #tpu.dot_dimension_numbers<[1], [0], [0], [1], [0, 0, 1, 1], [], []>} : vector<2x512xf32>, vector<512x256xf32>, vector<2x256xf32> -> vector<2x256xf32>
      %c0_18 = arith.constant 0 : index
      %c0_19 = arith.constant 0 : index
      %23 = vector.load %arg6[%c0_18, %c0_19] : memref<1x256xf32, #tpu.memory_space<vmem>>, vector<1x256xf32>
      %24 = vector.broadcast %23 : vector<1x256xf32> to vector<2x256xf32>
      %25 = arith.addf %22, %24 : vector<2x256xf32>
      %cst_20 = arith.constant 0.000000e+00 : f32
      %26 = vector.broadcast %cst_20 : f32 to vector<2x256xf32>
      %27 = arith.cmpf ogt, %25, %26 : vector<2x256xf32>
      %cst_21 = arith.constant 2.000000e-01 : f32
      %28 = vector.broadcast %cst_21 : f32 to vector<2x256xf32>
      %29 = arith.mulf %28, %25 : vector<2x256xf32>
      %30 = arith.select %27, %25, %29 : vector<2x256xi1>, vector<2x256xf32>
      %c0_22 = arith.constant 0 : index
      %c0_23 = arith.constant 0 : index
      %31 = vector.load %arg7[%c0_22, %c0_23] : memref<1x256xf32, #tpu.memory_space<vmem>>, vector<1x256xf32>
      %32 = vector.broadcast %31 : vector<1x256xf32> to vector<2x256xf32>
      %33 = arith.mulf %30, %32 : vector<2x256xf32>
      %cst_24 = arith.constant dense<0.000000e+00> : vector<2xf32>
      %34 = vector.multi_reduction <add>, %33, %cst_24 [1] : vector<2x256xf32> to vector<2xf32>
      %35 = vector.shape_cast %34 : vector<2xf32> to vector<2x1xf32>
      %c0_25 = arith.constant 0 : index
      %c0_26 = arith.constant 0 : index
      %36 = vector.load %arg8[%c0_25, %c0_26] : memref<1x1xf32, #tpu.memory_space<vmem>>, vector<1x1xf32>
      %37 = vector.broadcast %36 : vector<1x1xf32> to vector<2x1xf32>
      %38 = arith.addf %35, %37 : vector<2x1xf32>
      %c0_27 = arith.constant 0 : index
      %c0_28 = arith.constant 0 : index
      %39 = vector.load %arg9[%c0_27, %c0_28] : memref<2x1xf32, #tpu.memory_space<vmem>>, vector<2x1xf32>
      tpu.vector_store %arg9[%c0_27, %c0_28], %38 {strides = array<i32>} : memref<2x1xf32, #tpu.memory_space<vmem>>, vector<2x1xf32>,
    } else {
    }
    return
  }
  func.func @transform_0(%arg0: i32, %arg1: i32) -> (i32, i32) {
    %c0_i32 = arith.constant 0 : i32
    return %arg0, %arg1 : i32, i32
  }
  func.func @transform_1(%arg0: i32, %arg1: i32) -> (i32, i32) {
    %c0_i32 = arith.constant 0 : i32
    %c0_i32_0 = arith.constant 0 : i32
    return %arg1, %c0_i32 : i32, i32
  }
  func.func @transform_2(%arg0: i32, %arg1: i32) -> (i32, i32) {
    %c0_i32 = arith.constant 0 : i32
    %c0_i32_0 = arith.constant 0 : i32
    %c0_i32_1 = arith.constant 0 : i32
    return %c0_i32, %c0_i32_0 : i32, i32
  }
  func.func @transform_3(%arg0: i32, %arg1: i32) -> (i32, i32) {
    %c0_i32 = arith.constant 0 : i32
    %c0_i32_0 = arith.constant 0 : i32
    %c0_i32_1 = arith.constant 0 : i32
    return %c0_i32, %c0_i32_0 : i32, i32
  }
  func.func @transform_4(%arg0: i32, %arg1: i32) -> (i32, i32) {
    %c0_i32 = arith.constant 0 : i32
    %c0_i32_0 = arith.constant 0 : i32
    %c0_i32_1 = arith.constant 0 : i32
    return %c0_i32, %c0_i32_0 : i32, i32
  }
  func.func @transform_5(%arg0: i32, %arg1: i32) -> (i32, i32) {
    %c0_i32 = arith.constant 0 : i32
    %c0_i32_0 = arith.constant 0 : i32
    %c0_i32_1 = arith.constant 0 : i32
    return %c0_i32, %c0_i32_0 : i32, i32
  }
  func.func @transform_6(%arg0: i32, %arg1: i32) -> (i32, i32) {
    %c0_i32 = arith.constant 0 : i32
    %c0_i32_0 = arith.constant 0 : i32
    %c0_i32_1 = arith.constant 0 : i32
    return %c0_i32, %c0_i32_0 : i32, i32
  }
  func.func @transform_7(%arg0: i32, %arg1: i32) -> (i32, i32) {
    %c0_i32 = arith.constant 0 : i32
    %c0_i32_0 = arith.constant 0 : i32
    return %arg0, %c0_i32 : i32, i32
  }
}

</mosaic_0001>

<bundles_post_ra>
// kernel: discriminator_forward.1
= control target key start
LH: loop header
LB: loop body
LE: loop exit
PB: predicated region body
PF: predicated region fallthrough
CT: control target
= control target key end

     0   :  { %s6058_s26 = smov 0   ;;  %s6060_s27 = smov 0   ;;  %s7178_s0 = inlined_call_operand.vmem [shape: bf16[2,12288], index: 0, kind: input, shape index: {}]   ;;  %s7179_s1 = inlined_call_operand.vmem [shape: bf16[12288,512], index: 1, kind: input, shape index: {}]   ;;  %s7180_s2 = inlined_call_operand.vmem [shape: f32[1,512], index: 2, kind: input, shape index: {}]   ;;  %s7181_s3 = inlined_call_operand.vmem [shape: f32[512,256], index: 3, kind: input, shape index: {}]   ;;  %s7182_s4 = inlined_call_operand.vmem [shape: f32[1,256], index: 4, kind: input, shape index: {}]   ;;  %s7183_s5 = inlined_call_operand.vmem [shape: f32[1,256], index: 5, kind: input, shape index: {}]   ;;  %s7184_s6 = inlined_call_operand.<no memory space> [shape: f32[1,1], index: 6, kind: input, shape index: {}]   ;;  %s7185_s7 = inlined_call_operand.vmem [shape: f32[2,1], index: 7, kind: output, shape index: {}]  }
   0x1   :  { %v12_v0 = vstv %s7184_s6  ;;  %s6062_s28 = smov 0  }
   0x2   :  { %13 = vst [vmem:[#allocation3] sm:$0x1] %v12_v0 }
   0x3 LB: > { %s28_s6 = sadd.s32 1, %s6006_s27  ;;  %p4667_p0 = scmp.ge.s32.totalorder %s6010_s28, 1  ;;  %s6010_s28 = sphi %s6062_s28, %s19_s28   ;;  %s6006_s27 = sphi %s6060_s27, %s7187_s27   ;;  %s6002_s26 = sphi %s6058_s26, %s7186_s26  }
   0x4   : > { %p29_p1 = scmp.ge.s32.totalorder %s28_s6, 6  ;;  %p269_p2 = scmp.lt.s32.totalorder %s6010_s28, 7 }
   0x6   : > { %s7189_s6 = smov (%p29_p1, %s28_s6), 0  ;;  %p270_p3 = pnand %p4667_p0, %p269_p2 }
   0x7   : > { %s4668_s29 = sshll.u32 (!%p270_p3), %s6002_s26, 4  ;;  %s4669_s30 = sshll.u32 (!%p270_p3), %s6002_s26, 8 }
   0x8   : > { %273 = sbr.rel (%p270_p3) target bundleno = 1157 (0x485), region = 48  ;;  %p312_p4 = scmp.lt.s32.totalorder (!%p270_p3), %s4668_s29, 95 }
   0x9   : > { %p319_p5 = scmp.lt.s32.totalorder (!%p270_p3), %s4669_s30, 1535  ;;  %p4672_p6 = scmp.ne.s32.totalorder (!%p270_p3), %s6002_s26, 0 }
   0xd   : > { %s7191_s29 = smov (!%p312_p4, %s4668_s29), 95  ;;  %s7193_s30 = smov (!%p319_p5, %s4669_s30), 1535 }
   0xe   : > { %s6083_s10 = scalar_lea.vmem %s7178_s0, %s7191_s29  ;;  %s5190_s11 = sshll.u32 %s7193_s30, 4 }
   0xf   : > { %s6088_s14 = scalar_lea.vmem %s7179_s1, %s5190_s11  ;;  %332 = sbr.rel (%p4672_p6) target bundleno = 22 (0x16), region = 52 }
  0x14   : > { %v6012_v1 = vmov 0.0  }
  0x15   : > { %333 = vst [vmem:[#allocation2] sm:$0xff] %v6012_v1 }
  0x16 PF: > { %v5218_v2 = vld [vmem:[%s6088_s14 + $0xe4] ss:$16 sps:$4 sm:$0xff]   ;;  %v5222_v4 = vld [vmem:[%s6088_s14 + $0xe0] ss:$16 sps:$4 sm:$0xff]   ;;  %v6013_v38 = vmov 1966171168   ;;  %v855_v40 = vlaneseq }
  0x17   : > { %v5220_v3 = vld [vmem:[%s6088_s14 + $0x2e4] ss:$16 sps:$4 sm:$0xff]   ;;  %3525 = vmatprep.subr.bf16.mxu0 %v5218_v2  ;;  %v5223_v5 = vld [vmem:[%s6088_s14 + $0x2e0] ss:$16 sps:$4 sm:$0xff]   ;;  %v853_v39 = vunpack.c.l.s4 %v6013_v38  ;;  %p5185_p7 = scmp.ne.s32.totalorder %s6002_s26, 5 }
  0x18   : > { %3566 = vmatprep.subr.bf16.mxu1 %v5220_v3  ;;  %v5224_v6 = vld [vmem:[%s6088_s14 + $0xc4] ss:$16 sps:$4 sm:$0xff]   ;;  %3526 = vmatpush1.bf16.msra.mxu0 %v5222_v4  ;;  %v5228_v8 = vld [vmem:[%s6088_s14 + $0xc0] ss:$16 sps:$4 sm:$0xff]   ;;  %v6130_v45 = vshrl.u32 %v855_v40, 7 }
  0x19   : > { %3567 = vmatpush1.bf16.msra.mxu1 %v5223_v5  ;;  %v5226_v7 = vld [vmem:[%s6088_s14 + $0x2c4] ss:$16 sps:$4 sm:$0xff]   ;;  %3527 = vmatprep.subr.bf16.mxu0 %v5224_v6  ;;  %v5229_v9 = vld [vmem:[%s6088_s14 + $0x2c0] ss:$16 sps:$4 sm:$0xff]   ;;  %v854_v44 = vunpack.c.0.s8 %v853_v39 }
  0x1a   : > { %3568 = vmatprep.subr.bf16.mxu1 %v5226_v7  ;;  %v5230_v10 = vld [vmem:[%s6088_s14 + $0xa4] ss:$16 sps:$4 sm:$0xff]   ;;  %v5234_v12 = vld [vmem:[%s6088_s14 + $0xa0] ss:$16 sps:$4 sm:$0xff]  }
  0x1b   : > { %v5232_v11 = vld [vmem:[%s6088_s14 + $0x2a4] ss:$16 sps:$4 sm:$0xff]   ;;  %v5235_v13 = vld [vmem:[%s6088_s14 + $0x2a0] ss:$16 sps:$4 sm:$0xff]   ;;  %v6138_v51 = vsub.s32 %v854_v44, %v6130_v45 }
  0x1c   : > { %3528 = vmatpush1.bf16.msra.mxu0 %v5228_v8  ;;  %v5236_v14 = vld [vmem:[%s6088_s14 + $0x84] ss:$16 sps:$4 sm:$0xff]   ;;  %v5240_v16 = vld [vmem:[%s6088_s14 + $0x80] ss:$16 sps:$4 sm:$0xff]  }
  0x1d   : > { %3569 = vmatpush1.bf16.msra.mxu1 %v5229_v9  ;;  %3529 = vmatprep.subr.bf16.mxu0 %v5230_v10  ;;  %v5238_v15 = vld [vmem:[%s6088_s14 + $0x284] ss:$16 sps:$4 sm:$0xff]   ;;  %v5241_v17 = vld [vmem:[%s6088_s14 + $0x280] ss:$16 sps:$4 sm:$0xff]  }
  0x1e   : > { %3570 = vmatprep.subr.bf16.mxu1 %v5232_v11  ;;  %v5242_v18 = vld [vmem:[%s6088_s14 + $0x64] ss:$16 sps:$4 sm:$0xff]   ;;  %v5246_v20 = vld [vmem:[%s6088_s14 + $0x60] ss:$16 sps:$4 sm:$0xff]  }
  0x1f   : > { %v5244_v19 = vld [vmem:[%s6088_s14 + $0x264] ss:$16 sps:$4 sm:$0xff]   ;;  %v5247_v21 = vld [vmem:[%s6088_s14 + $0x260] ss:$16 sps:$4 sm:$0xff]  }
  0x20   : > { %3530 = vmatpush1.bf16.msra.mxu0 %v5234_v12  ;;  %v5248_v22 = vld [vmem:[%s6088_s14 + $0x44] ss:$16 sps:$4 sm:$0xff]   ;;  %v5252_v24 = vld [vmem:[%s6088_s14 + $0x40] ss:$16 sps:$4 sm:$0xff]  }
  0x21   : > { %3571 = vmatpush1.bf16.msra.mxu1 %v5235_v13  ;;  %3531 = vmatprep.subr.bf16.mxu0 %v5236_v14  ;;  %v5250_v23 = vld [vmem:[%s6088_s14 + $0x244] ss:$16 sps:$4 sm:$0xff]   ;;  %v5253_v25 = vld [vmem:[%s6088_s14 + $0x240] ss:$16 sps:$4 sm:$0xff]  }
  0x22   : > { %3572 = vmatprep.subr.bf16.mxu1 %v5238_v15  ;;  %v5254_v26 = vld [vmem:[%s6088_s14 + $0x24] ss:$16 sps:$4 sm:$0xff]   ;;  %v5258_v28 = vld [vmem:[%s6088_s14 + $0x20] ss:$16 sps:$4 sm:$0xff]  }
  0x23   : > { %v5256_v27 = vld [vmem:[%s6088_s14 + $0x224] ss:$16 sps:$4 sm:$0xff]   ;;  %v5259_v29 = vld [vmem:[%s6088_s14 + $0x220] ss:$16 sps:$4 sm:$0xff]  }
  0x24   : > { %3532 = vmatpush1.bf16.msra.mxu0 %v5240_v16  ;;  %v5260_v30 = vld [vmem:[%s6088_s14 + $0x4] ss:$16 sps:$4 sm:$0xff]   ;;  %v5264_v32 = vld [vmem:[%s6088_s14] ss:$16 sps:$4 sm:$0xff]  }
  0x25   : > { %3573 = vmatpush1.bf16.msra.mxu1 %v5241_v17  ;;  %3533 = vmatprep.subr.bf16.mxu0 %v5242_v18  ;;  %v5262_v31 = vld [vmem:[%s6088_s14 + $0x204] ss:$16 sps:$4 sm:$0xff]   ;;  %v5265_v33 = vld [vmem:[%s6088_s14 + $0x200] ss:$16 sps:$4 sm:$0xff]  }
  0x26   : > { %3574 = vmatprep.subr.bf16.mxu1 %v5244_v19  ;;  %v5266_v34 = vld [vmem:[%s6088_s14 + $0x1e4] ss:$16 sps:$4 sm:$0xff]   ;;  %v5270_v36 = vld [vmem:[%s6088_s14 + $0x1e0] ss:$16 sps:$4 sm:$0xff]  }
  0x27   : > { %v5268_v35 = vld [vmem:[%s6088_s14 + $0x3e4] ss:$16 sps:$4 sm:$0xff]   ;;  %v5271_v37 = vld [vmem:[%s6088_s14 + $0x3e0] ss:$16 sps:$4 sm:$0xff]  }
  0x28   : > { %3534 = vmatpush1.bf16.msra.mxu0 %v5246_v20  ;;  %v5272_v41 = vld [vmem:[%s6088_s14 + $0x1c4] ss:$16 sps:$4 sm:$0xff]   ;;  %v5276_v43 = vld [vmem:[%s6088_s14 + $0x1c0] ss:$16 sps:$4 sm:$0xff]  }
  0x29   : > { %3575 = vmatpush1.bf16.msra.mxu1 %v5247_v21  ;;  %3535 = vmatprep.subr.bf16.mxu0 %v5248_v22  ;;  %v5274_v42 = vld [vmem:[%s6088_s14 + $0x3c4] ss:$16 sps:$4 sm:$0xff]   ;;  %v5277_v46 = vld [vmem:[%s6088_s14 + $0x3c0] ss:$16 sps:$4 sm:$0xff]  }
  0x2a   : > { %3576 = vmatprep.subr.bf16.mxu1 %v5250_v23  ;;  %v5278_v47 = vld [vmem:[%s6088_s14 + $0x1a4] ss:$16 sps:$4 sm:$0xff]   ;;  %v5282_v49 = vld [vmem:[%s6088_s14 + $0x1a0] ss:$16 sps:$4 sm:$0xff]  }
  0x2b   : > { %v5280_v48 = vld [vmem:[%s6088_s14 + $0x3a4] ss:$16 sps:$4 sm:$0xff]   ;;  %v5283_v50 = vld [vmem:[%s6088_s14 + $0x3a0] ss:$16 sps:$4 sm:$0xff]  }
  0x2c   : > { %3536 = vmatpush1.bf16.msra.mxu0 %v5252_v24  ;;  %v5284_v52 = vld [vmem:[%s6088_s14 + $0x184] ss:$16 sps:$4 sm:$0xff]   ;;  %v5288_v55 = vld [vmem:[%s6088_s14 + $0x180] ss:$16 sps:$4 sm:$0xff]  }
  0x2d   : > { %3577 = vmatpush1.bf16.msra.mxu1 %v5253_v25  ;;  %3537 = vmatprep.subr.bf16.mxu0 %v5254_v26  ;;  %v5286_v53 = vld [vmem:[%s6088_s14 + $0x384] ss:$16 sps:$4 sm:$0xff]   ;;  %v5289_v57 = vld [vmem:[%s6088_s14 + $0x380] ss:$16 sps:$4 sm:$0xff]  }
  0x2e   : > { %3578 = vmatprep.subr.bf16.mxu1 %v5256_v27  ;;  %v335_v54 = vld [vmem:[%s6083_s10] sm:$0xff] }
  0x2f   : > { %v858_v56 = vrot.slane %v335_v54, %v6138_v51  ;;  %v5290_v58 = vld [vmem:[%s6088_s14 + $0x164] ss:$16 sps:$4 sm:$0xff]   ;;  %v5294_v61 = vld [vmem:[%s6088_s14 + $0x160] ss:$16 sps:$4 sm:$0xff]   ;;  %v851_v3 = vcombine.high %v335_v54, %v335_v54 }
  0x30   : > { %3538 = vmatpush1.bf16.msra.mxu0 %v5258_v28  ;;  %v5292_v59 = vld [vmem:[%s6088_s14 + $0x364] ss:$16 sps:$4 sm:$0xff]   ;;  %v5295_v63 = vld [vmem:[%s6088_s14 + $0x360] ss:$16 sps:$4 sm:$0xff]  }
  0x31   : > { %3579 = vmatpush1.bf16.msra.mxu1 %v5259_v29  ;;  %3539 = vmatprep.subr.bf16.mxu0 %v5260_v30  ;;  %v866_v60 = vcombine.high %v858_v56, %v858_v56  ;;  %v5296_v0 = vld [vmem:[%s6088_s14 + $0x144] ss:$16 sps:$4 sm:$0xff]   ;;  %v5300_v4 = vld [vmem:[%s6088_s14 + $0x140] ss:$16 sps:$4 sm:$0xff]   ;;  %v6166_v8 = vrot.slane %v851_v3, %v6138_v51  ;;  %v6176_v15 = vrot.slane %v858_v56, %v6138_v51 }
  0x32   : > { %3580 = vmatprep.subr.bf16.mxu1 %v5262_v31  ;;  %v5298_v1 = vld [vmem:[%s6088_s14 + $0x344] ss:$16 sps:$4 sm:$0xff]   ;;  %v5301_v5 = vld [vmem:[%s6088_s14 + $0x340] ss:$16 sps:$4 sm:$0xff]  }
  0x33   : > { %v6150_v62 = vrot.slane %v866_v60, %v6138_v51  ;;  %v5302_v6 = vld [vmem:[%s6088_s14 + $0x124] ss:$16 sps:$4 sm:$0xff]   ;;  %v5306_v9 = vld [vmem:[%s6088_s14 + $0x120] ss:$16 sps:$4 sm:$0xff]   ;;  %v867_v13 = vcombine.high %v6166_v8, %v6166_v8  ;;  %v6186_v20 = vcombine.high %v6176_v15, %v6176_v15 }
  0x34   : > { %3540 = vmatpush1.bf16.msra.mxu0 %v5264_v32  ;;  %v5304_v7 = vld [vmem:[%s6088_s14 + $0x324] ss:$16 sps:$4 sm:$0xff]   ;;  %v5307_v10 = vld [vmem:[%s6088_s14 + $0x320] ss:$16 sps:$4 sm:$0xff]  }
  0x35   : > { %3581 = vmatpush1.bf16.msra.mxu1 %v5265_v33  ;;  %3541 = vmatprep.subr.bf16.mxu0 %v5266_v34  ;;  %v6157_v2 = vcombine.high %v6150_v62, %v6150_v62  ;;  %v5308_v11 = vld [vmem:[%s6088_s14 + $0x104] ss:$16 sps:$4 sm:$0xff]   ;;  %v5312_v14 = vld [vmem:[%s6088_s14 + $0x100] ss:$16 sps:$4 sm:$0xff]   ;;  %v6182_v19 = vrot.slane %v867_v13, %v6138_v51 }
  0x36   : > { %3582 = vmatprep.subr.bf16.mxu1 %v5268_v35  ;;  %3557 = vmatprep.mubr.bf16.mxu0 %v6150_v62  ;;  %v5310_v12 = vld [vmem:[%s6088_s14 + $0x304] ss:$16 sps:$4 sm:$0xff]   ;;  %v5313_v16 = vld [vmem:[%s6088_s14 + $0x300] ss:$16 sps:$4 sm:$0xff]  }
  0x37   : > { %3598 = vmatprep.mubr.bf16.mxu1 %v6157_v2  ;;  %v5316_v17 = vld [vmem:[%s6088_s14 + $0x4e4] ss:$16 sps:$4 sm:$0xff]   ;;  %v5314_v21 = vld [vmem:[%s6088_s14 + $0x4e0] ss:$16 sps:$4 sm:$0xff]   ;;  %v6194_v25 = vcombine.high %v6182_v19, %v6182_v19 }
  0x38   : > { %3542 = vmatpush2.bf16.msra.mxu0 %v5270_v36  ;;  %v5319_v18 = vld [vmem:[%s6088_s14 + $0x6e4] ss:$16 sps:$4 sm:$0xff]   ;;  %v5317_v22 = vld [vmem:[%s6088_s14 + $0x6e0] ss:$16 sps:$4 sm:$0xff]  }
  0x39   : > { %3583 = vmatpush2.bf16.msra.mxu1 %v5271_v37  ;;  %3543 = vmatprep.subr.bf16.mxu0 %v5272_v41  ;;  %v5322_v23 = vld [vmem:[%s6088_s14 + $0x4c4] ss:$16 sps:$4 sm:$0xff]   ;;  %v5320_v26 = vld [vmem:[%s6088_s14 + $0x4c0] ss:$16 sps:$4 sm:$0xff]  }
  0x3a   : > { %3584 = vmatprep.subr.bf16.mxu1 %v5274_v42  ;;  %v5325_v24 = vld [vmem:[%s6088_s14 + $0x6c4] ss:$16 sps:$4 sm:$0xff]   ;;  %v5323_v27 = vld [vmem:[%s6088_s14 + $0x6c0] ss:$16 sps:$4 sm:$0xff]  }
  0x3b   : > { %v5328_v28 = vld [vmem:[%s6088_s14 + $0x4a4] ss:$16 sps:$4 sm:$0xff]   ;;  %v5326_v30 = vld [vmem:[%s6088_s14 + $0x4a0] ss:$16 sps:$4 sm:$0xff]  }
  0x3c   : > { %3544 = vmatpush2.bf16.msra.mxu0 %v5276_v43  ;;  %v5331_v29 = vld [vmem:[%s6088_s14 + $0x6a4] ss:$16 sps:$4 sm:$0xff]   ;;  %v5329_v31 = vld [vmem:[%s6088_s14 + $0x6a0] ss:$16 sps:$4 sm:$0xff]  }
  0x3d   : > { %3585 = vmatpush2.bf16.msra.mxu1 %v5277_v46  ;;  %3545 = vmatprep.subr.bf16.mxu0 %v5278_v47  ;;  %v5334_v32 = vld [vmem:[%s6088_s14 + $0x484] ss:$16 sps:$4 sm:$0xff]   ;;  %v5332_v34 = vld [vmem:[%s6088_s14 + $0x480] ss:$16 sps:$4 sm:$0xff]  }
  0x3e   : > { %3586 = vmatprep.subr.bf16.mxu1 %v5280_v48  ;;  %v5337_v33 = vld [vmem:[%s6088_s14 + $0x684] ss:$16 sps:$4 sm:$0xff]   ;;  %v5335_v35 = vld [vmem:[%s6088_s14 + $0x680] ss:$16 sps:$4 sm:$0xff]  }
  0x3f   : > { %v5340_v36 = vld [vmem:[%s6088_s14 + $0x464] ss:$16 sps:$4 sm:$0xff]   ;;  %v5338_v38 = vld [vmem:[%s6088_s14 + $0x460] ss:$16 sps:$4 sm:$0xff]  }
  0x40   : > { %3546 = vmatpush2.bf16.msra.mxu0 %v5282_v49  ;;  %v5343_v37 = vld [vmem:[%s6088_s14 + $0x664] ss:$16 sps:$4 sm:$0xff]   ;;  %v5341_v39 = vld [vmem:[%s6088_s14 + $0x660] ss:$16 sps:$4 sm:$0xff]  }
  0x41   : > { %3587 = vmatpush2.bf16.msra.mxu1 %v5283_v50  ;;  %3547 = vmatprep.subr.bf16.mxu0 %v5284_v52  ;;  %v5346_v40 = vld [vmem:[%s6088_s14 + $0x444] ss:$16 sps:$4 sm:$0xff]   ;;  %v5344_v42 = vld [vmem:[%s6088_s14 + $0x440] ss:$16 sps:$4 sm:$0xff]  }
  0x42   : > { %3588 = vmatprep.subr.bf16.mxu1 %v5286_v53  ;;  %v5349_v41 = vld [vmem:[%s6088_s14 + $0x644] ss:$16 sps:$4 sm:$0xff]   ;;  %v5347_v43 = vld [vmem:[%s6088_s14 + $0x640] ss:$16 sps:$4 sm:$0xff]  }
  0x43   : > { %v5352_v44 = vld [vmem:[%s6088_s14 + $0x424] ss:$16 sps:$4 sm:$0xff]   ;;  %v5350_v47 = vld [vmem:[%s6088_s14 + $0x420] ss:$16 sps:$4 sm:$0xff]  }
  0x44   : > { %3548 = vmatpush2.bf16.msra.mxu0 %v5288_v55  ;;  %v5355_v46 = vld [vmem:[%s6088_s14 + $0x624] ss:$16 sps:$4 sm:$0xff]   ;;  %v5353_v48 = vld [vmem:[%s6088_s14 + $0x620] ss:$16 sps:$4 sm:$0xff]  }
  0x45   : > { %3589 = vmatpush2.bf16.msra.mxu1 %v5289_v57  ;;  %3549 = vmatprep.subr.bf16.mxu0 %v5290_v58  ;;  %v5358_v49 = vld [vmem:[%s6088_s14 + $0x404] ss:$16 sps:$4 sm:$0xff]   ;;  %v5356_v52 = vld [vmem:[%s6088_s14 + $0x400] ss:$16 sps:$4 sm:$0xff]  }
  0x46   : > { %3590 = vmatprep.subr.bf16.mxu1 %v5292_v59  ;;  %v5361_v50 = vld [vmem:[%s6088_s14 + $0x604] ss:$16 sps:$4 sm:$0xff]   ;;  %v5359_v53 = vld [vmem:[%s6088_s14 + $0x600] ss:$16 sps:$4 sm:$0xff]  }
  0x47   : > { %v5364_v54 = vld [vmem:[%s6088_s14 + $0x5e4] ss:$16 sps:$4 sm:$0xff]   ;;  %v5362_v56 = vld [vmem:[%s6088_s14 + $0x5e0] ss:$16 sps:$4 sm:$0xff]  }
  0x48   : > { %3550 = vmatpush2.bf16.msra.mxu0 %v5294_v61  ;;  %v5367_v55 = vld [vmem:[%s6088_s14 + $0x7e4] ss:$16 sps:$4 sm:$0xff]   ;;  %v5365_v57 = vld [vmem:[%s6088_s14 + $0x7e0] ss:$16 sps:$4 sm:$0xff]  }
  0x49   : > { %3591 = vmatpush2.bf16.msra.mxu1 %v5295_v63  ;;  %3551 = vmatprep.subr.bf16.mxu0 %v5296_v0  ;;  %v5370_v58 = vld [vmem:[%s6088_s14 + $0x5c4] ss:$16 sps:$4 sm:$0xff]   ;;  %v5368_v60 = vld [vmem:[%s6088_s14 + $0x5c0] ss:$16 sps:$4 sm:$0xff]  }
  0x4a   : > { %3592 = vmatprep.subr.bf16.mxu1 %v5298_v1  ;;  %v5373_v59 = vld [vmem:[%s6088_s14 + $0x7c4] ss:$16 sps:$4 sm:$0xff]   ;;  %v5371_v61 = vld [vmem:[%s6088_s14 + $0x7c0] ss:$16 sps:$4 sm:$0xff]  }
  0x4b   : > { %v5376_v63 = vld [vmem:[%s6088_s14 + $0x5a4] ss:$16 sps:$4 sm:$0xff]   ;;  %v5374_v1 = vld [vmem:[%s6088_s14 + $0x5a0] ss:$16 sps:$4 sm:$0xff]  }
  0x4c   : > { %3552 = vmatpush2.bf16.msra.mxu0 %v5300_v4  ;;  %v5379_v0 = vld [vmem:[%s6088_s14 + $0x7a4] ss:$16 sps:$4 sm:$0xff]   ;;  %v5377_v3 = vld [vmem:[%s6088_s14 + $0x7a0] ss:$16 sps:$4 sm:$0xff]  }
  0x4d   : > { %3593 = vmatpush2.bf16.msra.mxu1 %v5301_v5  ;;  %3553 = vmatprep.subr.bf16.mxu0 %v5302_v6  ;;  %v5382_v4 = vld [vmem:[%s6088_s14 + $0x584] ss:$16 sps:$4 sm:$0xff]   ;;  %v5380_v6 = vld [vmem:[%s6088_s14 + $0x580] ss:$16 sps:$4 sm:$0xff]  }
  0x4e   : > { %3594 = vmatprep.subr.bf16.mxu1 %v5304_v7  ;;  %v5385_v5 = vld [vmem:[%s6088_s14 + $0x784] ss:$16 sps:$4 sm:$0xff]   ;;  %v5383_v7 = vld [vmem:[%s6088_s14 + $0x780] ss:$16 sps:$4 sm:$0xff]  }
  0x4f   : > { %v5394_v13 = vld [vmem:[%s6088_s14 + $0x544] ss:$16 sps:$4 sm:$0xff]  }
  0x50   : > { %3554 = vmatpush2.bf16.msra.mxu0 %v5306_v9  ;;  %v5388_v9 = vld [vmem:[%s6088_s14 + $0x564] ss:$16 sps:$4 sm:$0xff]  }
  0x51   : > { %3595 = vmatpush2.bf16.msra.mxu1 %v5307_v10  ;;  %3555 = vmatprep.subr.bf16.mxu0 %v5308_v11  ;;  %v5391_v10 = vld [vmem:[%s6088_s14 + $0x764] ss:$16 sps:$4 sm:$0xff]   ;;  %v5386_v11 = vld [vmem:[%s6088_s14 + $0x560] ss:$16 sps:$4 sm:$0xff]  }
  0x52   : > { %3596 = vmatprep.subr.bf16.mxu1 %v5310_v12  ;;  %v5389_v12 = vld [vmem:[%s6088_s14 + $0x760] ss:$16 sps:$4 sm:$0xff]  }
  0x54   : > { %3556 = vmatpush2.bf16.msra.mxu0 %v5312_v14  ;;  %v5397_v14 = vld [vmem:[%s6088_s14 + $0x744] ss:$16 sps:$4 sm:$0xff]  }
  0x55   : > { %3597 = vmatpush2.bf16.msra.mxu1 %v5313_v16  ;;  %3607 = vmatprep.subr.bf16.mxu0 %v5316_v17  ;;  %v5392_v16 = vld [vmem:[%s6088_s14 + $0x540] ss:$16 sps:$4 sm:$0xff]  }
  0x56   : > { %3648 = vmatprep.subr.bf16.mxu1 %v5319_v18  ;;  %v5395_v17 = vld [vmem:[%s6088_s14 + $0x740] ss:$16 sps:$4 sm:$0xff]   ;;  %v5400_v18 = vld [vmem:[%s6088_s14 + $0x524] ss:$16 sps:$4 sm:$0xff]  }
  0x57   : > { %3558 = vmatmul.mubr.bf16.vlgmr.msra.gmra.mxu0 %v6176_v15 }
  0x58   : > { %3599 = vmatmul.mubr.bf16.vlgmr.msra.gmra.mxu1 %v6186_v20  ;;  %3608 = vmatpush1.bf16.msra.mxu0 %v5314_v21  ;;  %v5403_v21 = vld [vmem:[%s6088_s14 + $0x724] ss:$16 sps:$4 sm:$0xff]  }
  0x59   : > { %3649 = vmatpush1.bf16.msra.mxu1 %v5317_v22  ;;  %3609 = vmatprep.subr.bf16.mxu0 %v5322_v23  ;;  %v5398_v22 = vld [vmem:[%s6088_s14 + $0x520] ss:$16 sps:$4 sm:$0xff]  }
  0x5a   : > { %3650 = vmatprep.subr.bf16.mxu1 %v5325_v24  ;;  %3639 = vmatprep.mubr.bf16.mxu0 %v6182_v19  ;;  %v5401_v23 = vld [vmem:[%s6088_s14 + $0x720] ss:$16 sps:$4 sm:$0xff]   ;;  %v5406_v24 = vld [vmem:[%s6088_s14 + $0x504] ss:$16 sps:$4 sm:$0xff]  }
  0x5b   : > { %3680 = vmatprep.mubr.bf16.mxu1 %v6194_v25 }
  0x5c   : > { %3610 = vmatpush1.bf16.msra.mxu0 %v5320_v26  ;;  %v5409_v26 = vld [vmem:[%s6088_s14 + $0x704] ss:$16 sps:$4 sm:$0xff]  }
  0x5d   : > { %3651 = vmatpush1.bf16.msra.mxu1 %v5323_v27  ;;  %3611 = vmatprep.subr.bf16.mxu0 %v5328_v28  ;;  %v5404_v27 = vld [vmem:[%s6088_s14 + $0x500] ss:$16 sps:$4 sm:$0xff]   ;;  %v6259_v28 = vrot.slane %v6166_v8, %v6138_v51 }
  0x5e   : > { %3652 = vmatprep.subr.bf16.mxu1 %v5331_v29  ;;  %v5407_v29 = vld [vmem:[%s6088_s14 + $0x700] ss:$16 sps:$4 sm:$0xff]  }
  0x5f   : > { %v5414_v8 = vld [vmem:[%s6088_s14 + $0xae0] ss:$16 sps:$4 sm:$0xff]  }
  0x60   : > { %3612 = vmatpush1.bf16.msra.mxu0 %v5326_v30  ;;  %v5413_v30 = vld [vmem:[%s6088_s14 + $0x8e4] ss:$16 sps:$4 sm:$0xff]  }
  0x61   : > { %3653 = vmatpush1.bf16.msra.mxu1 %v5329_v31  ;;  %3613 = vmatprep.subr.bf16.mxu0 %v5334_v32  ;;  %v5416_v31 = vld [vmem:[%s6088_s14 + $0xae4] ss:$16 sps:$4 sm:$0xff]   ;;  %v6266_v32 = vcombine.high %v6259_v28, %v6259_v28 }
  0x62   : > { %3654 = vmatprep.subr.bf16.mxu1 %v5337_v33  ;;  %v5411_v33 = vld [vmem:[%s6088_s14 + $0x8e0] ss:$16 sps:$4 sm:$0xff]  }
  0x64   : > { %3614 = vmatpush1.bf16.msra.mxu0 %v5332_v34  ;;  %v6271_v34 = vld [vmem:[%s6083_s10 + $0x8] sm:$0xff] }
  0x65   : > { %3655 = vmatpush1.bf16.msra.mxu1 %v5335_v35  ;;  %3615 = vmatprep.subr.bf16.mxu0 %v5340_v36  ;;  %v5419_v35 = vld [vmem:[%s6088_s14 + $0x8c4] ss:$16 sps:$4 sm:$0xff]  }
  0x66   : > { %3656 = vmatprep.subr.bf16.mxu1 %v5343_v37  ;;  %v5422_v36 = vld [vmem:[%s6088_s14 + $0xac4] ss:$16 sps:$4 sm:$0xff]   ;;  %v6277_v37 = vrot.slane %v6271_v34, %v6138_v51 }
  0x68   : > { %3616 = vmatpush1.bf16.msra.mxu0 %v5338_v38  ;;  %v915_v38 = vcombine.high %v6277_v37, %v6277_v37 }
  0x69   : > { %3657 = vmatpush1.bf16.msra.mxu1 %v5341_v39  ;;  %3617 = vmatprep.subr.bf16.mxu0 %v5346_v40  ;;  %v5417_v39 = vld [vmem:[%s6088_s14 + $0x8c0] ss:$16 sps:$4 sm:$0xff]  }
  0x6a   : > { %3658 = vmatprep.subr.bf16.mxu1 %v5349_v41  ;;  %v5420_v40 = vld [vmem:[%s6088_s14 + $0xac0] ss:$16 sps:$4 sm:$0xff]   ;;  %v5425_v41 = vld [vmem:[%s6088_s14 + $0x8a4] ss:$16 sps:$4 sm:$0xff]  }
  0x6c   : > { %3618 = vmatpush1.bf16.msra.mxu0 %v5344_v42  ;;  %v5428_v42 = vld [vmem:[%s6088_s14 + $0xaa4] ss:$16 sps:$4 sm:$0xff]  }
  0x6d   : > { %3659 = vmatpush1.bf16.msra.mxu1 %v5347_v43  ;;  %3619 = vmatprep.subr.bf16.mxu0 %v5352_v44  ;;  %v6288_v43 = vrot.slane %v915_v38, %v6138_v51  ;;  %v5489_v38 = vld [vmem:[%s6088_s14 + $0x940] ss:$16 sps:$4 sm:$0xff]  }
  0x6e   : > { %3660 = vmatprep.subr.bf16.mxu1 %v5355_v46  ;;  %v5423_v46 = vld [vmem:[%s6088_s14 + $0x8a0] ss:$16 sps:$4 sm:$0xff]  }
  0x6f   : > { %v6293_v44 = vcombine.high %v6288_v43, %v6288_v43 }
  0x70   : > { %3620 = vmatpush1.bf16.msra.mxu0 %v5350_v47  ;;  %v5426_v47 = vld [vmem:[%s6088_s14 + $0xaa0] ss:$16 sps:$4 sm:$0xff]  }
  0x71   : > { %3661 = vmatpush1.bf16.msra.mxu1 %v5353_v48  ;;  %3621 = vmatprep.subr.bf16.mxu0 %v5358_v49  ;;  %v5431_v48 = vld [vmem:[%s6088_s14 + $0x884] ss:$16 sps:$4 sm:$0xff]  }
  0x72   : > { %3662 = vmatprep.subr.bf16.mxu1 %v5361_v50  ;;  %v5434_v49 = vld [vmem:[%s6088_s14 + $0xa84] ss:$16 sps:$4 sm:$0xff]   ;;  %v5429_v50 = vld [vmem:[%s6088_s14 + $0x880] ss:$16 sps:$4 sm:$0xff]  }
  0x74   : > { %3622 = vmatpush1.bf16.msra.mxu0 %v5356_v52  ;;  %v5432_v52 = vld [vmem:[%s6088_s14 + $0xa80] ss:$16 sps:$4 sm:$0xff]  }
  0x75   : > { %3663 = vmatpush1.bf16.msra.mxu1 %v5359_v53  ;;  %3623 = vmatprep.subr.bf16.mxu0 %v5364_v54  ;;  %v5437_v53 = vld [vmem:[%s6088_s14 + $0x864] ss:$16 sps:$4 sm:$0xff]  }
  0x76   : > { %3664 = vmatprep.subr.bf16.mxu1 %v5367_v55  ;;  %v5440_v54 = vld [vmem:[%s6088_s14 + $0xa64] ss:$16 sps:$4 sm:$0xff]   ;;  %v5435_v55 = vld [vmem:[%s6088_s14 + $0x860] ss:$16 sps:$4 sm:$0xff]  }
  0x78   : > { %3624 = vmatpush2.bf16.msra.mxu0 %v5362_v56  ;;  %v5438_v56 = vld [vmem:[%s6088_s14 + $0xa60] ss:$16 sps:$4 sm:$0xff]  }
  0x79   : > { %3665 = vmatpush2.bf16.msra.mxu1 %v5365_v57  ;;  %3625 = vmatprep.subr.bf16.mxu0 %v5370_v58  ;;  %v5443_v57 = vld [vmem:[%s6088_s14 + $0x844] ss:$16 sps:$4 sm:$0xff]  }
  0x7a   : > { %3666 = vmatprep.subr.bf16.mxu1 %v5373_v59  ;;  %v5446_v58 = vld [vmem:[%s6088_s14 + $0xa44] ss:$16 sps:$4 sm:$0xff]   ;;  %v5441_v59 = vld [vmem:[%s6088_s14 + $0x840] ss:$16 sps:$4 sm:$0xff]  }
  0x7c   : > { %3626 = vmatpush2.bf16.msra.mxu0 %v5368_v60  ;;  %v5444_v60 = vld [vmem:[%s6088_s14 + $0xa40] ss:$16 sps:$4 sm:$0xff]  }
  0x7d   : > { %3667 = vmatpush2.bf16.msra.mxu1 %v5371_v61  ;;  %3627 = vmatprep.subr.bf16.mxu0 %v5376_v63  ;;  %v5449_v61 = vld [vmem:[%s6088_s14 + $0x824] ss:$16 sps:$4 sm:$0xff]  }
  0x7e   : > { %3668 = vmatprep.subr.bf16.mxu1 %v5379_v0  ;;  %v5452_v63 = vld [vmem:[%s6088_s14 + $0xa24] ss:$16 sps:$4 sm:$0xff]   ;;  %v5447_v0 = vld [vmem:[%s6088_s14 + $0x820] ss:$16 sps:$4 sm:$0xff]  }
  0x80   : > { %3628 = vmatpush2.bf16.msra.mxu0 %v5374_v1  ;;  %v5450_v1 = vld [vmem:[%s6088_s14 + $0xa20] ss:$16 sps:$4 sm:$0xff]  }
  0x81   : > { %3669 = vmatpush2.bf16.msra.mxu1 %v5377_v3  ;;  %3629 = vmatprep.subr.bf16.mxu0 %v5382_v4  ;;  %v5455_v3 = vld [vmem:[%s6088_s14 + $0x804] ss:$16 sps:$4 sm:$0xff]  }
  0x82   : > { %3670 = vmatprep.subr.bf16.mxu1 %v5385_v5  ;;  %v5458_v4 = vld [vmem:[%s6088_s14 + $0xa04] ss:$16 sps:$4 sm:$0xff]   ;;  %v5453_v5 = vld [vmem:[%s6088_s14 + $0x800] ss:$16 sps:$4 sm:$0xff]  }
  0x84   : > { %3630 = vmatpush2.bf16.msra.mxu0 %v5380_v6  ;;  %v5456_v6 = vld [vmem:[%s6088_s14 + $0xa00] ss:$16 sps:$4 sm:$0xff]  }
  0x85   : > { %3671 = vmatpush2.bf16.msra.mxu1 %v5383_v7  ;;  %3631 = vmatprep.subr.bf16.mxu0 %v5388_v9  ;;  %v5461_v7 = vld [vmem:[%s6088_s14 + $0x9e4] ss:$16 sps:$4 sm:$0xff]  }
  0x86   : > { %3672 = vmatprep.subr.bf16.mxu1 %v5391_v10  ;;  %v5464_v9 = vld [vmem:[%s6088_s14 + $0xbe4] ss:$16 sps:$4 sm:$0xff]   ;;  %v5459_v10 = vld [vmem:[%s6088_s14 + $0x9e0] ss:$16 sps:$4 sm:$0xff]  }
  0x88   : > { %3632 = vmatpush2.bf16.msra.mxu0 %v5386_v11  ;;  %v5462_v11 = vld [vmem:[%s6088_s14 + $0xbe0] ss:$16 sps:$4 sm:$0xff]  }
  0x89   : > { %3673 = vmatpush2.bf16.msra.mxu1 %v5389_v12  ;;  %3633 = vmatprep.subr.bf16.mxu0 %v5394_v13  ;;  %v5467_v12 = vld [vmem:[%s6088_s14 + $0x9c4] ss:$16 sps:$4 sm:$0xff]  }
  0x8a   : > { %3674 = vmatprep.subr.bf16.mxu1 %v5397_v14  ;;  %v5470_v13 = vld [vmem:[%s6088_s14 + $0xbc4] ss:$16 sps:$4 sm:$0xff]   ;;  %v5465_v14 = vld [vmem:[%s6088_s14 + $0x9c0] ss:$16 sps:$4 sm:$0xff]  }
  0x8c   : > { %3634 = vmatpush2.bf16.msra.mxu0 %v5392_v16  ;;  %v5468_v16 = vld [vmem:[%s6088_s14 + $0xbc0] ss:$16 sps:$4 sm:$0xff]  }
  0x8d   : > { %3675 = vmatpush2.bf16.msra.mxu1 %v5395_v17  ;;  %3635 = vmatprep.subr.bf16.mxu0 %v5400_v18  ;;  %v5473_v17 = vld [vmem:[%s6088_s14 + $0x9a4] ss:$16 sps:$4 sm:$0xff]  }
  0x8e   : > { %3676 = vmatprep.subr.bf16.mxu1 %v5403_v21  ;;  %v5476_v18 = vld [vmem:[%s6088_s14 + $0xba4] ss:$16 sps:$4 sm:$0xff]   ;;  %v5471_v21 = vld [vmem:[%s6088_s14 + $0x9a0] ss:$16 sps:$4 sm:$0xff]  }
  0x90   : > { %3636 = vmatpush2.bf16.msra.mxu0 %v5398_v22  ;;  %v5474_v22 = vld [vmem:[%s6088_s14 + $0xba0] ss:$16 sps:$4 sm:$0xff]  }
  0x91   : > { %3677 = vmatpush2.bf16.msra.mxu1 %v5401_v23  ;;  %3637 = vmatprep.subr.bf16.mxu0 %v5406_v24  ;;  %v5479_v23 = vld [vmem:[%s6088_s14 + $0x984] ss:$16 sps:$4 sm:$0xff]  }
  0x92   : > { %3678 = vmatprep.subr.bf16.mxu1 %v5409_v26  ;;  %v5482_v24 = vld [vmem:[%s6088_s14 + $0xb84] ss:$16 sps:$4 sm:$0xff]   ;;  %v5477_v26 = vld [vmem:[%s6088_s14 + $0x980] ss:$16 sps:$4 sm:$0xff]  }
  0x94   : > { %3638 = vmatpush2.bf16.msra.mxu0 %v5404_v27  ;;  %v5480_v27 = vld [vmem:[%s6088_s14 + $0xb80] ss:$16 sps:$4 sm:$0xff]  }
  0x95   : > { %3679 = vmatpush2.bf16.msra.mxu1 %v5407_v29  ;;  %3689 = vmatprep.subr.bf16.mxu0 %v5413_v30  ;;  %v5485_v29 = vld [vmem:[%s6088_s14 + $0x964] ss:$16 sps:$4 sm:$0xff]  }
  0x96   : > { %3730 = vmatprep.subr.bf16.mxu1 %v5416_v31  ;;  %v5488_v30 = vld [vmem:[%s6088_s14 + $0xb64] ss:$16 sps:$4 sm:$0xff]   ;;  %v5483_v31 = vld [vmem:[%s6088_s14 + $0x960] ss:$16 sps:$4 sm:$0xff]  }
  0x97   : > { %3640 = vmatmul.mubr.bf16.vlgmr.msra.gmra.mxu0 %v6259_v28 }
  0x98   : > { %3681 = vmatmul.mubr.bf16.vlgmr.msra.gmra.mxu1 %v6266_v32  ;;  %3690 = vmatpush1.bf16.msra.mxu0 %v5411_v33  ;;  %v5486_v33 = vld [vmem:[%s6088_s14 + $0xb60] ss:$16 sps:$4 sm:$0xff]  }
  0x99   : > { %3731 = vmatpush1.bf16.msra.mxu1 %v5414_v8  ;;  %3691 = vmatprep.subr.bf16.mxu0 %v5419_v35  ;;  %v5491_v8 = vld [vmem:[%s6088_s14 + $0x944] ss:$16 sps:$4 sm:$0xff]  }
  0x9a   : > { %3732 = vmatprep.subr.bf16.mxu1 %v5422_v36  ;;  %3721 = vmatprep.mubr.bf16.mxu0 %v6288_v43  ;;  %v5494_v35 = vld [vmem:[%s6088_s14 + $0xb44] ss:$16 sps:$4 sm:$0xff]   ;;  %v900_v36 = vcombine.high %v6271_v34, %v6271_v34  ;;  %v5495_v34 = vld [vmem:[%s6088_s14 + $0x920] ss:$16 sps:$4 sm:$0xff]  }
  0x9b   : > { %3762 = vmatprep.mubr.bf16.mxu1 %v6293_v44 }
  0x9c   : > { %3692 = vmatpush1.bf16.msra.mxu0 %v5417_v39  ;;  %v5492_v39 = vld [vmem:[%s6088_s14 + $0xb40] ss:$16 sps:$4 sm:$0xff]  }
  0x9d   : > { %3733 = vmatpush1.bf16.msra.mxu1 %v5420_v40  ;;  %3693 = vmatprep.subr.bf16.mxu0 %v5425_v41  ;;  %v5497_v40 = vld [vmem:[%s6088_s14 + $0x924] ss:$16 sps:$4 sm:$0xff]  }
  0x9e   : > { %3734 = vmatprep.subr.bf16.mxu1 %v5428_v42  ;;  %v5500_v41 = vld [vmem:[%s6088_s14 + $0xb24] ss:$16 sps:$4 sm:$0xff]   ;;  %v6347_v42 = vrot.slane %v900_v36, %v6138_v51  ;;  %v5558_v36 = vld [vmem:[%s6088_s14 + $0xfe0] ss:$16 sps:$4 sm:$0xff]  }
  0xa0   : > { %3694 = vmatpush1.bf16.msra.mxu0 %v5423_v46  ;;  %v5498_v46 = vld [vmem:[%s6088_s14 + $0xb20] ss:$16 sps:$4 sm:$0xff]  }
  0xa1   : > { %3735 = vmatpush1.bf16.msra.mxu1 %v5426_v47  ;;  %3695 = vmatprep.subr.bf16.mxu0 %v5431_v48  ;;  %v5503_v47 = vld [vmem:[%s6088_s14 + $0x904] ss:$16 sps:$4 sm:$0xff]  }
  0xa2   : > { %3736 = vmatprep.subr.bf16.mxu1 %v5434_v49  ;;  %v5506_v48 = vld [vmem:[%s6088_s14 + $0xb04] ss:$16 sps:$4 sm:$0xff]   ;;  %v916_v49 = vcombine.high %v6347_v42, %v6347_v42 }
  0xa4   : > { %3696 = vmatpush1.bf16.msra.mxu0 %v5429_v50  ;;  %v6357_v50 = vrot.slane %v6277_v37, %v6138_v51  ;;  %v5507_v37 = vld [vmem:[%s6088_s14 + $0xce0] ss:$16 sps:$4 sm:$0xff]  }
  0xa5   : > { %3737 = vmatpush1.bf16.msra.mxu1 %v5432_v52  ;;  %3697 = vmatprep.subr.bf16.mxu0 %v5437_v53  ;;  %v5501_v52 = vld [vmem:[%s6088_s14 + $0x900] ss:$16 sps:$4 sm:$0xff]  }
  0xa6   : > { %3738 = vmatprep.subr.bf16.mxu1 %v5440_v54  ;;  %v5504_v53 = vld [vmem:[%s6088_s14 + $0xb00] ss:$16 sps:$4 sm:$0xff]   ;;  %v5509_v54 = vld [vmem:[%s6088_s14 + $0xce4] ss:$16 sps:$4 sm:$0xff]  }
  0xa8   : > { %3698 = vmatpush1.bf16.msra.mxu0 %v5435_v55  ;;  %v5512_v55 = vld [vmem:[%s6088_s14 + $0xee4] ss:$16 sps:$4 sm:$0xff]  }
  0xa9   : > { %3739 = vmatpush1.bf16.msra.mxu1 %v5438_v56  ;;  %3699 = vmatprep.subr.bf16.mxu0 %v5443_v57  ;;  %v6364_v56 = vrot.slane %v916_v49, %v6138_v51  ;;  %v6368_v57 = vcombine.high %v6357_v50, %v6357_v50  ;;  %v5575_v49 = vld [vmem:[%s6088_s14 + $0xd84] ss:$16 sps:$4 sm:$0xff]  }
  0xaa   : > { %3740 = vmatprep.subr.bf16.mxu1 %v5446_v58  ;;  %v5510_v58 = vld [vmem:[%s6088_s14 + $0xee0] ss:$16 sps:$4 sm:$0xff]  }
  0xac   : > { %3700 = vmatpush1.bf16.msra.mxu0 %v5441_v59  ;;  %v5515_v59 = vld [vmem:[%s6088_s14 + $0xcc4] ss:$16 sps:$4 sm:$0xff]  }
  0xad   : > { %3741 = vmatpush1.bf16.msra.mxu1 %v5444_v60  ;;  %3701 = vmatprep.subr.bf16.mxu0 %v5449_v61  ;;  %v5518_v60 = vld [vmem:[%s6088_s14 + $0xec4] ss:$16 sps:$4 sm:$0xff]   ;;  %v6376_v61 = vcombine.high %v6364_v56, %v6364_v56 }
  0xae   : > { %3742 = vmatprep.subr.bf16.mxu1 %v5452_v63  ;;  %v5513_v63 = vld [vmem:[%s6088_s14 + $0xcc0] ss:$16 sps:$4 sm:$0xff]  }
  0xb0   : > { %3702 = vmatpush1.bf16.msra.mxu0 %v5447_v0  ;;  %v5516_v0 = vld [vmem:[%s6088_s14 + $0xec0] ss:$16 sps:$4 sm:$0xff]  }
  0xb1   : > { %3743 = vmatpush1.bf16.msra.mxu1 %v5450_v1  ;;  %3703 = vmatprep.subr.bf16.mxu0 %v5455_v3  ;;  %v5521_v1 = vld [vmem:[%s6088_s14 + $0xca4] ss:$16 sps:$4 sm:$0xff]  }
  0xb2   : > { %3744 = vmatprep.subr.bf16.mxu1 %v5458_v4  ;;  %v5524_v3 = vld [vmem:[%s6088_s14 + $0xea4] ss:$16 sps:$4 sm:$0xff]   ;;  %v5519_v4 = vld [vmem:[%s6088_s14 + $0xca0] ss:$16 sps:$4 sm:$0xff]  }
  0xb4   : > { %3704 = vmatpush1.bf16.msra.mxu0 %v5453_v5  ;;  %v5522_v5 = vld [vmem:[%s6088_s14 + $0xea0] ss:$16 sps:$4 sm:$0xff]  }
  0xb5   : > { %3745 = vmatpush1.bf16.msra.mxu1 %v5456_v6  ;;  %3705 = vmatprep.subr.bf16.mxu0 %v5461_v7  ;;  %v5527_v6 = vld [vmem:[%s6088_s14 + $0xc84] ss:$16 sps:$4 sm:$0xff]  }
  0xb6   : > { %3746 = vmatprep.subr.bf16.mxu1 %v5464_v9  ;;  %v5530_v7 = vld [vmem:[%s6088_s14 + $0xe84] ss:$16 sps:$4 sm:$0xff]   ;;  %v5525_v9 = vld [vmem:[%s6088_s14 + $0xc80] ss:$16 sps:$4 sm:$0xff]  }
  0xb8   : > { %3706 = vmatpush2.bf16.msra.mxu0 %v5459_v10  ;;  %v5528_v10 = vld [vmem:[%s6088_s14 + $0xe80] ss:$16 sps:$4 sm:$0xff]  }
  0xb9   : > { %3747 = vmatpush2.bf16.msra.mxu1 %v5462_v11  ;;  %3707 = vmatprep.subr.bf16.mxu0 %v5467_v12  ;;  %v5533_v11 = vld [vmem:[%s6088_s14 + $0xc64] ss:$16 sps:$4 sm:$0xff]  }
  0xba   : > { %3748 = vmatprep.subr.bf16.mxu1 %v5470_v13  ;;  %v5536_v12 = vld [vmem:[%s6088_s14 + $0xe64] ss:$16 sps:$4 sm:$0xff]   ;;  %v5531_v13 = vld [vmem:[%s6088_s14 + $0xc60] ss:$16 sps:$4 sm:$0xff]  }
  0xbc   : > { %3708 = vmatpush2.bf16.msra.mxu0 %v5465_v14  ;;  %v5534_v14 = vld [vmem:[%s6088_s14 + $0xe60] ss:$16 sps:$4 sm:$0xff]  }
  0xbd   : > { %3749 = vmatpush2.bf16.msra.mxu1 %v5468_v16  ;;  %3709 = vmatprep.subr.bf16.mxu0 %v5473_v17  ;;  %v5539_v16 = vld [vmem:[%s6088_s14 + $0xc44] ss:$16 sps:$4 sm:$0xff]  }
  0xbe   : > { %3750 = vmatprep.subr.bf16.mxu1 %v5476_v18  ;;  %v5542_v17 = vld [vmem:[%s6088_s14 + $0xe44] ss:$16 sps:$4 sm:$0xff]   ;;  %v5537_v18 = vld [vmem:[%s6088_s14 + $0xc40] ss:$16 sps:$4 sm:$0xff]  }
  0xc0   : > { %3710 = vmatpush2.bf16.msra.mxu0 %v5471_v21  ;;  %v5540_v21 = vld [vmem:[%s6088_s14 + $0xe40] ss:$16 sps:$4 sm:$0xff]  }
  0xc1   : > { %3751 = vmatpush2.bf16.msra.mxu1 %v5474_v22  ;;  %3711 = vmatprep.subr.bf16.mxu0 %v5479_v23  ;;  %v5545_v22 = vld [vmem:[%s6088_s14 + $0xc24] ss:$16 sps:$4 sm:$0xff]  }
  0xc2   : > { %3752 = vmatprep.subr.bf16.mxu1 %v5482_v24  ;;  %v5548_v23 = vld [vmem:[%s6088_s14 + $0xe24] ss:$16 sps:$4 sm:$0xff]   ;;  %v5543_v24 = vld [vmem:[%s6088_s14 + $0xc20] ss:$16 sps:$4 sm:$0xff]  }
  0xc4   : > { %3712 = vmatpush2.bf16.msra.mxu0 %v5477_v26  ;;  %v5546_v26 = vld [vmem:[%s6088_s14 + $0xe20] ss:$16 sps:$4 sm:$0xff]  }
  0xc5   : > { %3753 = vmatpush2.bf16.msra.mxu1 %v5480_v27  ;;  %3713 = vmatprep.subr.bf16.mxu0 %v5485_v29  ;;  %v5551_v27 = vld [vmem:[%s6088_s14 + $0xc04] ss:$16 sps:$4 sm:$0xff]  }
  0xc6   : > { %3754 = vmatprep.subr.bf16.mxu1 %v5488_v30  ;;  %v5554_v29 = vld [vmem:[%s6088_s14 + $0xe04] ss:$16 sps:$4 sm:$0xff]   ;;  %v5549_v30 = vld [vmem:[%s6088_s14 + $0xc00] ss:$16 sps:$4 sm:$0xff]  }
  0xc8   : > { %3714 = vmatpush2.bf16.msra.mxu0 %v5483_v31  ;;  %v5552_v31 = vld [vmem:[%s6088_s14 + $0xe00] ss:$16 sps:$4 sm:$0xff]  }
  0xc9   : > { %3755 = vmatpush2.bf16.msra.mxu1 %v5486_v33  ;;  %3715 = vmatprep.subr.bf16.mxu0 %v5491_v8  ;;  %v5557_v33 = vld [vmem:[%s6088_s14 + $0xde4] ss:$16 sps:$4 sm:$0xff]  }
  0xca   : > { %3756 = vmatprep.subr.bf16.mxu1 %v5494_v35  ;;  %v5560_v8 = vld [vmem:[%s6088_s14 + $0xfe4] ss:$16 sps:$4 sm:$0xff]   ;;  %v5555_v35 = vld [vmem:[%s6088_s14 + $0xde0] ss:$16 sps:$4 sm:$0xff]  }
  0xcc   : > { %3716 = vmatpush2.bf16.msra.mxu0 %v5489_v38  ;;  %v5563_v38 = vld [vmem:[%s6088_s14 + $0xdc4] ss:$16 sps:$4 sm:$0xff]  }
  0xcd   : > { %3757 = vmatpush2.bf16.msra.mxu1 %v5492_v39  ;;  %3717 = vmatprep.subr.bf16.mxu0 %v5497_v40  ;;  %v5566_v39 = vld [vmem:[%s6088_s14 + $0xfc4] ss:$16 sps:$4 sm:$0xff]   ;;  %v5561_v40 = vld [vmem:[%s6088_s14 + $0xdc0] ss:$16 sps:$4 sm:$0xff]  }
  0xce   : > { %3758 = vmatprep.subr.bf16.mxu1 %v5500_v41  ;;  %v5564_v41 = vld [vmem:[%s6088_s14 + $0xfc0] ss:$16 sps:$4 sm:$0xff]  }
  0xd0   : > { %3718 = vmatpush2.bf16.msra.mxu0 %v5495_v34  ;;  %v5569_v34 = vld [vmem:[%s6088_s14 + $0xda4] ss:$16 sps:$4 sm:$0xff]  }
  0xd1   : > { %3759 = vmatpush2.bf16.msra.mxu1 %v5498_v46  ;;  %3719 = vmatprep.subr.bf16.mxu0 %v5503_v47  ;;  %v5572_v46 = vld [vmem:[%s6088_s14 + $0xfa4] ss:$16 sps:$4 sm:$0xff]   ;;  %v5567_v47 = vld [vmem:[%s6088_s14 + $0xda0] ss:$16 sps:$4 sm:$0xff]  }
  0xd2   : > { %3760 = vmatprep.subr.bf16.mxu1 %v5506_v48  ;;  %v5570_v48 = vld [vmem:[%s6088_s14 + $0xfa0] ss:$16 sps:$4 sm:$0xff]  }
  0xd4   : > { %3720 = vmatpush2.bf16.msra.mxu0 %v5501_v52  ;;  %v5578_v52 = vld [vmem:[%s6088_s14 + $0xf84] ss:$16 sps:$4 sm:$0xff]  }
  0xd5   : > { %3761 = vmatpush2.bf16.msra.mxu1 %v5504_v53  ;;  %3771 = vmatprep.subr.bf16.mxu0 %v5509_v54  ;;  %v5573_v53 = vld [vmem:[%s6088_s14 + $0xd80] ss:$16 sps:$4 sm:$0xff]  }
  0xd6   : > { %3812 = vmatprep.subr.bf16.mxu1 %v5512_v55  ;;  %v5576_v54 = vld [vmem:[%s6088_s14 + $0xf80] ss:$16 sps:$4 sm:$0xff]   ;;  %v5581_v55 = vld [vmem:[%s6088_s14 + $0xd64] ss:$16 sps:$4 sm:$0xff]  }
  0xd7   : > { %3722 = vmatmul.mubr.bf16.vlgmr.msra.gmra.mxu0 %v6357_v50 }
  0xd8   : > { %3763 = vmatmul.mubr.bf16.vlgmr.msra.gmra.mxu1 %v6368_v57  ;;  %3772 = vmatpush1.bf16.msra.mxu0 %v5507_v37  ;;  %v5584_v37 = vld [vmem:[%s6088_s14 + $0xf64] ss:$16 sps:$4 sm:$0xff]  }
  0xd9   : > { %3813 = vmatpush1.bf16.msra.mxu1 %v5510_v58  ;;  %3773 = vmatprep.subr.bf16.mxu0 %v5515_v59  ;;  %v5579_v58 = vld [vmem:[%s6088_s14 + $0xd60] ss:$16 sps:$4 sm:$0xff]  }
  0xda   : > { %3814 = vmatprep.subr.bf16.mxu1 %v5518_v60  ;;  %3803 = vmatprep.mubr.bf16.mxu0 %v6364_v56  ;;  %v5582_v59 = vld [vmem:[%s6088_s14 + $0xf60] ss:$16 sps:$4 sm:$0xff]   ;;  %v5587_v60 = vld [vmem:[%s6088_s14 + $0xd44] ss:$16 sps:$4 sm:$0xff]  }
  0xdb   : > { %3844 = vmatprep.mubr.bf16.mxu1 %v6376_v61 }
  0xdc   : > { %3774 = vmatpush1.bf16.msra.mxu0 %v5513_v63  ;;  %v5590_v63 = vld [vmem:[%s6088_s14 + $0xf44] ss:$16 sps:$4 sm:$0xff]  }
  0xdd   : > { %3815 = vmatpush1.bf16.msra.mxu1 %v5516_v0  ;;  %3775 = vmatprep.subr.bf16.mxu0 %v5521_v1  ;;  %v5585_v0 = vld [vmem:[%s6088_s14 + $0xd40] ss:$16 sps:$4 sm:$0xff]  }
  0xde   : > { %3816 = vmatprep.subr.bf16.mxu1 %v5524_v3  ;;  %v5588_v1 = vld [vmem:[%s6088_s14 + $0xf40] ss:$16 sps:$4 sm:$0xff]   ;;  %v5593_v3 = vld [vmem:[%s6088_s14 + $0xd24] ss:$16 sps:$4 sm:$0xff]  }
  0xe0   : > { %3776 = vmatpush1.bf16.msra.mxu0 %v5519_v4  ;;  %v5596_v4 = vld [vmem:[%s6088_s14 + $0xf24] ss:$16 sps:$4 sm:$0xff]  }
  0xe1   : > { %3817 = vmatpush1.bf16.msra.mxu1 %v5522_v5  ;;  %3777 = vmatprep.subr.bf16.mxu0 %v5527_v6  ;;  %v5591_v5 = vld [vmem:[%s6088_s14 + $0xd20] ss:$16 sps:$4 sm:$0xff]  }
  0xe2   : > { %3818 = vmatprep.subr.bf16.mxu1 %v5530_v7  ;;  %v5594_v6 = vld [vmem:[%s6088_s14 + $0xf20] ss:$16 sps:$4 sm:$0xff]   ;;  %v5599_v7 = vld [vmem:[%s6088_s14 + $0xd04] ss:$16 sps:$4 sm:$0xff]  }
  0xe4   : > { %3778 = vmatpush1.bf16.msra.mxu0 %v5525_v9  ;;  %v5602_v9 = vld [vmem:[%s6088_s14 + $0xf04] ss:$16 sps:$4 sm:$0xff]  }
  0xe5   : > { %3819 = vmatpush1.bf16.msra.mxu1 %v5528_v10  ;;  %3779 = vmatprep.subr.bf16.mxu0 %v5533_v11  ;;  %v6440_v10 = vrot.slane %v6347_v42, %v6138_v51  ;;  %v5597_v11 = vld [vmem:[%s6088_s14 + $0xd00] ss:$16 sps:$4 sm:$0xff]   ;;  %v5607_v51 = vld [vmem:[%s6088_s14 + $0x2e8] ss:$16 sps:$4 sm:$0xff]   ;;  %v5612_v42 = vld [vmem:[%s6088_s14 + $0xcc] ss:$16 sps:$4 sm:$0xff]  }
  0xe6   : > { %3820 = vmatprep.subr.bf16.mxu1 %v5536_v12  ;;  %v5600_v12 = vld [vmem:[%s6088_s14 + $0xf00] ss:$16 sps:$4 sm:$0xff]  }
  0xe8   : > { %3780 = vmatpush1.bf16.msra.mxu0 %v5531_v13  ;;  %v5606_v13 = vld [vmem:[%s6088_s14 + $0xec] ss:$16 sps:$4 sm:$0xff]  }
  0xe9   : > { %3821 = vmatpush1.bf16.msra.mxu1 %v5534_v14  ;;  %3781 = vmatprep.subr.bf16.mxu0 %v5539_v16  ;;  %v5609_v14 = vld [vmem:[%s6088_s14 + $0x2ec] ss:$16 sps:$4 sm:$0xff]   ;;  %v6448_v16 = vcombine.high %v6440_v10, %v6440_v10 }
  0xea   : > { %3822 = vmatprep.subr.bf16.mxu1 %v5542_v17  ;;  %v5604_v17 = vld [vmem:[%s6088_s14 + $0xe8] ss:$16 sps:$4 sm:$0xff]  }
  0xec   : > { %3782 = vmatpush1.bf16.msra.mxu0 %v5537_v18  ;;  %v5615_v18 = vld [vmem:[%s6088_s14 + $0x2cc] ss:$16 sps:$4 sm:$0xff]  }
  0xed   : > { %3823 = vmatpush1.bf16.msra.mxu1 %v5540_v21  ;;  %3783 = vmatprep.subr.bf16.mxu0 %v5545_v22  ;;  %v5610_v21 = vld [vmem:[%s6088_s14 + $0xc8] ss:$16 sps:$4 sm:$0xff]  }
  0xee   : > { %3824 = vmatprep.subr.bf16.mxu1 %v5548_v23 }
  0xf0   : > { %3784 = vmatpush1.bf16.msra.mxu0 %v5543_v24  ;;  %v5613_v24 = vld [vmem:[%s6088_s14 + $0x2c8] ss:$16 sps:$4 sm:$0xff]  }
  0xf1   : > { %3825 = vmatpush1.bf16.msra.mxu1 %v5546_v26  ;;  %3785 = vmatprep.subr.bf16.mxu0 %v5551_v27 }
  0xf2   : > { %3826 = vmatprep.subr.bf16.mxu1 %v5554_v29 }
  0xf4   : > { %3786 = vmatpush1.bf16.msra.mxu0 %v5549_v30  ;;  %v5618_v30 = vld [vmem:[%s6088_s14 + $0xac] ss:$16 sps:$4 sm:$0xff]  }
  0xf5   : > { %3827 = vmatpush1.bf16.msra.mxu1 %v5552_v31  ;;  %3787 = vmatprep.subr.bf16.mxu0 %v5557_v33  ;;  %v5621_v31 = vld [vmem:[%s6088_s14 + $0x2ac] ss:$16 sps:$4 sm:$0xff]  }
  0xf6   : > { %3828 = vmatprep.subr.bf16.mxu1 %v5560_v8  ;;  %v5616_v8 = vld [vmem:[%s6088_s14 + $0xa8] ss:$16 sps:$4 sm:$0xff]  }
  0xf8   : > { %3788 = vmatpush2.bf16.msra.mxu0 %v5555_v35  ;;  %v5619_v35 = vld [vmem:[%s6088_s14 + $0x2a8] ss:$16 sps:$4 sm:$0xff]  }
  0xf9   : > { %3829 = vmatpush2.bf16.msra.mxu1 %v5558_v36  ;;  %3789 = vmatprep.subr.bf16.mxu0 %v5563_v38 }
  0xfa   : > { %3830 = vmatprep.subr.bf16.mxu1 %v5566_v39 }
  0xfc   : > { %3790 = vmatpush2.bf16.msra.mxu0 %v5561_v40 }
  0xfd   : > { %3831 = vmatpush2.bf16.msra.mxu1 %v5564_v41  ;;  %3791 = vmatprep.subr.bf16.mxu0 %v5569_v34  ;;  %v5624_v41 = vld [vmem:[%s6088_s14 + $0x8c] ss:$16 sps:$4 sm:$0xff]  }
  0xfe   : > { %3832 = vmatprep.subr.bf16.mxu1 %v5572_v46  ;;  %v5627_v34 = vld [vmem:[%s6088_s14 + $0x28c] ss:$16 sps:$4 sm:$0xff]  }
  0xff   : > { %v5630_v46 = vld [vmem:[%s6088_s14 + $0x6c] ss:$16 sps:$4 sm:$0xff]  }
 0x100   : > { %3792 = vmatpush2.bf16.msra.mxu0 %v5567_v47  ;;  %v5633_v47 = vld [vmem:[%s6088_s14 + $0x26c] ss:$16 sps:$4 sm:$0xff]  }
 0x101   : > { %3833 = vmatpush2.bf16.msra.mxu1 %v5570_v48  ;;  %3793 = vmatprep.subr.bf16.mxu0 %v5575_v49  ;;  %v5628_v48 = vld [vmem:[%s6088_s14 + $0x68] ss:$16 sps:$4 sm:$0xff]  }
 0x102   : > { %3834 = vmatprep.subr.bf16.mxu1 %v5578_v52  ;;  %v5631_v49 = vld [vmem:[%s6088_s14 + $0x268] ss:$16 sps:$4 sm:$0xff]   ;;  %v5636_v52 = vld [vmem:[%s6088_s14 + $0x4c] ss:$16 sps:$4 sm:$0xff]  }
 0x104   : > { %3794 = vmatpush2.bf16.msra.mxu0 %v5573_v53  ;;  %v5639_v53 = vld [vmem:[%s6088_s14 + $0x24c] ss:$16 sps:$4 sm:$0xff]  }
 0x105   : > { %3835 = vmatpush2.bf16.msra.mxu1 %v5576_v54  ;;  %3795 = vmatprep.subr.bf16.mxu0 %v5581_v55  ;;  %v5634_v54 = vld [vmem:[%s6088_s14 + $0x48] ss:$16 sps:$4 sm:$0xff]  }
 0x106   : > { %3836 = vmatprep.subr.bf16.mxu1 %v5584_v37  ;;  %v5637_v55 = vld [vmem:[%s6088_s14 + $0x248] ss:$16 sps:$4 sm:$0xff]   ;;  %v5642_v37 = vld [vmem:[%s6088_s14 + $0x2c] ss:$16 sps:$4 sm:$0xff]  }
 0x108   : > { %3796 = vmatpush2.bf16.msra.mxu0 %v5579_v58  ;;  %v5645_v58 = vld [vmem:[%s6088_s14 + $0x22c] ss:$16 sps:$4 sm:$0xff]  }
 0x109   : > { %3837 = vmatpush2.bf16.msra.mxu1 %v5582_v59  ;;  %3797 = vmatprep.subr.bf16.mxu0 %v5587_v60  ;;  %v5640_v59 = vld [vmem:[%s6088_s14 + $0x28] ss:$16 sps:$4 sm:$0xff]  }
 0x10a   : > { %3838 = vmatprep.subr.bf16.mxu1 %v5590_v63  ;;  %v5643_v60 = vld [vmem:[%s6088_s14 + $0x228] ss:$16 sps:$4 sm:$0xff]   ;;  %v5648_v63 = vld [vmem:[%s6088_s14 + $0xc] ss:$16 sps:$4 sm:$0xff]  }
 0x10c   : > { %3798 = vmatpush2.bf16.msra.mxu0 %v5585_v0  ;;  %v5651_v0 = vld [vmem:[%s6088_s14 + $0x20c] ss:$16 sps:$4 sm:$0xff]  }
 0x10d   : > { %3839 = vmatpush2.bf16.msra.mxu1 %v5588_v1  ;;  %3799 = vmatprep.subr.bf16.mxu0 %v5593_v3  ;;  %v5646_v1 = vld [vmem:[%s6088_s14 + $0x8] ss:$16 sps:$4 sm:$0xff]  }
 0x10e   : > { %3840 = vmatprep.subr.bf16.mxu1 %v5596_v4  ;;  %v5649_v3 = vld [vmem:[%s6088_s14 + $0x208] ss:$16 sps:$4 sm:$0xff]   ;;  %v5654_v4 = vld [vmem:[%s6088_s14 + $0x1ec] ss:$16 sps:$4 sm:$0xff]  }
 0x110   : > { %3800 = vmatpush2.bf16.msra.mxu0 %v5591_v5  ;;  %v5657_v5 = vld [vmem:[%s6088_s14 + $0x3ec] ss:$16 sps:$4 sm:$0xff]  }
 0x111   : > { %3841 = vmatpush2.bf16.msra.mxu1 %v5594_v6  ;;  %3801 = vmatprep.subr.bf16.mxu0 %v5599_v7  ;;  %v5652_v6 = vld [vmem:[%s6088_s14 + $0x1e8] ss:$16 sps:$4 sm:$0xff]  }
 0x112   : > { %3842 = vmatprep.subr.bf16.mxu1 %v5602_v9  ;;  %v5655_v7 = vld [vmem:[%s6088_s14 + $0x3e8] ss:$16 sps:$4 sm:$0xff]   ;;  %v5660_v9 = vld [vmem:[%s6088_s14 + $0x1cc] ss:$16 sps:$4 sm:$0xff]  }
 0x114   : > { %3802 = vmatpush2.bf16.msra.mxu0 %v5597_v11  ;;  %v5663_v11 = vld [vmem:[%s6088_s14 + $0x3cc] ss:$16 sps:$4 sm:$0xff]  }
 0x115   : > { %3843 = vmatpush2.bf16.msra.mxu1 %v5600_v12  ;;  %3853 = vmatprep.subr.bf16.mxu0 %v5606_v13  ;;  %v5658_v12 = vld [vmem:[%s6088_s14 + $0x1c8] ss:$16 sps:$4 sm:$0xff]  }
 0x116   : > { %3894 = vmatprep.subr.bf16.mxu1 %v5609_v14  ;;  %v5661_v13 = vld [vmem:[%s6088_s14 + $0x3c8] ss:$16 sps:$4 sm:$0xff]   ;;  %v5666_v14 = vld [vmem:[%s6088_s14 + $0x1ac] ss:$16 sps:$4 sm:$0xff]  }
 0x117   : > { %v3559_v22 = vpop.f32.mrf.mxu0  ;;  %3804 = vmatmul.mubr.bf16.vlgmr.msra.gmra.mxu0 %v6440_v10 }
 0x118   : > { %v3600_v23 = vpop.f32.mrf.mxu1  ;;  %3845 = vmatmul.mubr.bf16.vlgmr.msra.gmra.mxu1 %v6448_v16  ;;  %3854 = vmatpush1.bf16.msra.mxu0 %v5604_v17  ;;  %v5669_v17 = vld [vmem:[%s6088_s14 + $0x3ac] ss:$16 sps:$4 sm:$0xff]  }
 0x119   : > { %v6458_v26 = vadd.f32 %v3600_v23, %v3559_v22  ;;  %3895 = vmatpush1.bf16.msra.mxu1 %v5607_v51  ;;  %v3561_v27 = vpop.f32.mrf.mxu0  ;;  %3855 = vmatprep.subr.bf16.mxu0 %v5612_v42  ;;  %v5664_v51 = vld [vmem:[%s6088_s14 + $0x1a8] ss:$16 sps:$4 sm:$0xff]  }
 0x11a   : > { %v3602_v29 = vpop.f32.mrf.mxu1  ;;  %3896 = vmatprep.subr.bf16.mxu1 %v5615_v18  ;;  %3885 = vmatprep.mubr.bf16.mxu0 %v6150_v62  ;;  %v5622_v62 = vld [vmem:[%s6088_s14 + $0x88] ss:$16 sps:$4 sm:$0xff]   ;;  %v5672_v18 = vld [vmem:[%s6088_s14 + $0x18c] ss:$16 sps:$4 sm:$0xff]  }
 0x11b   : > { %v6462_v33 = vadd.f32 %v3602_v29, %v3561_v27  ;;  %3926 = vmatprep.mubr.bf16.mxu1 %v6157_v2  ;;  %v3563_v36 = vpop.f32.mrf.mxu0  ;;  %v5625_v2 = vld [vmem:[%s6088_s14 + $0x288] ss:$16 sps:$4 sm:$0xff]   ;;  %v5681_v27 = vld [vmem:[%s6088_s14 + $0x36c] ss:$16 sps:$4 sm:$0xff]  }
 0x11c   : > { %v3604_v38 = vpop.f32.mrf.mxu1  ;;  %3856 = vmatpush1.bf16.msra.mxu0 %v5610_v21  ;;  %v5667_v42 = vld [vmem:[%s6088_s14 + $0x3a8] ss:$16 sps:$4 sm:$0xff]   ;;  %v5675_v21 = vld [vmem:[%s6088_s14 + $0x38c] ss:$16 sps:$4 sm:$0xff]  }
 0x11d   : > { %3897 = vmatpush1.bf16.msra.mxu1 %v5613_v24  ;;  %v3564_v39 = vpop.f32.mrf.mxu0  ;;  %3857 = vmatprep.subr.bf16.mxu0 %v5618_v30  ;;  %v5670_v22 = vld [vmem:[%s6088_s14 + $0x188] ss:$16 sps:$4 sm:$0xff]   ;;  %v5678_v24 = vld [vmem:[%s6088_s14 + $0x16c] ss:$16 sps:$4 sm:$0xff]  }
 0x11e   : > { %v3605_v40 = vpop.f32.mrf.mxu1  ;;  %3898 = vmatprep.subr.bf16.mxu1 %v5621_v31  ;;  %v5673_v23 = vld [vmem:[%s6088_s14 + $0x388] ss:$16 sps:$4 sm:$0xff]   ;;  %v5684_v31 = vld [vmem:[%s6088_s14 + $0x14c] ss:$16 sps:$4 sm:$0xff]  }
 0x11f   : > { %v5676_v29 = vld [vmem:[%s6088_s14 + $0x168] ss:$16 sps:$4 sm:$0xff]   ;;  %v5690_v38 = vld [vmem:[%s6088_s14 + $0x12c] ss:$16 sps:$4 sm:$0xff]  }
 0x120   : > { %3858 = vmatpush1.bf16.msra.mxu0 %v5616_v8  ;;  %v5679_v30 = vld [vmem:[%s6088_s14 + $0x368] ss:$16 sps:$4 sm:$0xff]   ;;  %v5687_v8 = vld [vmem:[%s6088_s14 + $0x34c] ss:$16 sps:$4 sm:$0xff]  }
 0x121   : > { %3899 = vmatpush1.bf16.msra.mxu1 %v5619_v35  ;;  %3859 = vmatprep.subr.bf16.mxu0 %v5624_v41  ;;  %v5682_v35 = vld [vmem:[%s6088_s14 + $0x148] ss:$16 sps:$4 sm:$0xff]   ;;  %v5693_v39 = vld [vmem:[%s6088_s14 + $0x32c] ss:$16 sps:$4 sm:$0xff]  }
 0x122   : > { %3900 = vmatprep.subr.bf16.mxu1 %v5627_v34  ;;  %v5685_v36 = vld [vmem:[%s6088_s14 + $0x348] ss:$16 sps:$4 sm:$0xff]   ;;  %v5696_v34 = vld [vmem:[%s6088_s14 + $0x10c] ss:$16 sps:$4 sm:$0xff]  }
 0x123   : > { %v5688_v40 = vld [vmem:[%s6088_s14 + $0x128] ss:$16 sps:$4 sm:$0xff]  }
 0x124   : > { %3860 = vmatpush1.bf16.msra.mxu0 %v5622_v62  ;;  %v5691_v41 = vld [vmem:[%s6088_s14 + $0x328] ss:$16 sps:$4 sm:$0xff]   ;;  %v5699_v62 = vld [vmem:[%s6088_s14 + $0x30c] ss:$16 sps:$4 sm:$0xff]  }
 0x125   : > { %3901 = vmatpush1.bf16.msra.mxu1 %v5625_v2  ;;  %3861 = vmatprep.subr.bf16.mxu0 %v5630_v46  ;;  %v5694_v2 = vld [vmem:[%s6088_s14 + $0x108] ss:$16 sps:$4 sm:$0xff]  }
 0x126   : > { %3902 = vmatprep.subr.bf16.mxu1 %v5633_v47  ;;  %v5697_v46 = vld [vmem:[%s6088_s14 + $0x308] ss:$16 sps:$4 sm:$0xff]   ;;  %v5702_v47 = vld [vmem:[%s6088_s14 + $0x4ec] ss:$16 sps:$4 sm:$0xff]  }
 0x128   : > { %3862 = vmatpush1.bf16.msra.mxu0 %v5628_v48  ;;  %v5705_v48 = vld [vmem:[%s6088_s14 + $0x6ec] ss:$16 sps:$4 sm:$0xff]  }
 0x129   : > { %3903 = vmatpush1.bf16.msra.mxu1 %v5631_v49  ;;  %3863 = vmatprep.subr.bf16.mxu0 %v5636_v52  ;;  %v5700_v49 = vld [vmem:[%s6088_s14 + $0x4e8] ss:$16 sps:$4 sm:$0xff]  }
 0x12a   : > { %3904 = vmatprep.subr.bf16.mxu1 %v5639_v53  ;;  %v5703_v52 = vld [vmem:[%s6088_s14 + $0x6e8] ss:$16 sps:$4 sm:$0xff]   ;;  %v5708_v53 = vld [vmem:[%s6088_s14 + $0x4cc] ss:$16 sps:$4 sm:$0xff]  }
 0x12c   : > { %3864 = vmatpush1.bf16.msra.mxu0 %v5634_v54  ;;  %v5711_v54 = vld [vmem:[%s6088_s14 + $0x6cc] ss:$16 sps:$4 sm:$0xff]  }
 0x12d   : > { %3905 = vmatpush1.bf16.msra.mxu1 %v5637_v55  ;;  %3865 = vmatprep.subr.bf16.mxu0 %v5642_v37 }
 0x12e   : > { %3906 = vmatprep.subr.bf16.mxu1 %v5645_v58 }
 0x130   : > { %3866 = vmatpush1.bf16.msra.mxu0 %v5640_v59  ;;  %v5706_v59 = vld [vmem:[%s6088_s14 + $0x4c8] ss:$16 sps:$4 sm:$0xff]  }
 0x131   : > { %3907 = vmatpush1.bf16.msra.mxu1 %v5643_v60  ;;  %3867 = vmatprep.subr.bf16.mxu0 %v5648_v63  ;;  %v5709_v60 = vld [vmem:[%s6088_s14 + $0x6c8] ss:$16 sps:$4 sm:$0xff]  }
 0x132   : > { %3908 = vmatprep.subr.bf16.mxu1 %v5651_v0 }
 0x134   : > { %3868 = vmatpush1.bf16.msra.mxu0 %v5646_v1  ;;  %v5714_v1 = vld [vmem:[%s6088_s14 + $0x4ac] ss:$16 sps:$4 sm:$0xff]  }
 0x135   : > { %3909 = vmatpush1.bf16.msra.mxu1 %v5649_v3  ;;  %3869 = vmatprep.subr.bf16.mxu0 %v5654_v4  ;;  %v5717_v3 = vld [vmem:[%s6088_s14 + $0x6ac] ss:$16 sps:$4 sm:$0xff]  }
 0x136   : > { %3910 = vmatprep.subr.bf16.mxu1 %v5657_v5 }
 0x138   : > { %3870 = vmatpush2.bf16.msra.mxu0 %v5652_v6  ;;  %v5712_v6 = vld [vmem:[%s6088_s14 + $0x4a8] ss:$16 sps:$4 sm:$0xff]  }
 0x139   : > { %3911 = vmatpush2.bf16.msra.mxu1 %v5655_v7  ;;  %3871 = vmatprep.subr.bf16.mxu0 %v5660_v9  ;;  %v5715_v7 = vld [vmem:[%s6088_s14 + $0x6a8] ss:$16 sps:$4 sm:$0xff]  }
 0x13a   : > { %3912 = vmatprep.subr.bf16.mxu1 %v5663_v11 }
 0x13c   : > { %3872 = vmatpush2.bf16.msra.mxu0 %v5658_v12  ;;  %v5721_v12 = vld [vmem:[%s6088_s14 + $0x688] ss:$16 sps:$4 sm:$0xff]  }
 0x13d   : > { %3913 = vmatpush2.bf16.msra.mxu1 %v5661_v13  ;;  %3873 = vmatprep.subr.bf16.mxu0 %v5666_v14  ;;  %v5726_v13 = vld [vmem:[%s6088_s14 + $0x46c] ss:$16 sps:$4 sm:$0xff]  }
 0x13e   : > { %3914 = vmatprep.subr.bf16.mxu1 %v5669_v17  ;;  %v5729_v14 = vld [vmem:[%s6088_s14 + $0x66c] ss:$16 sps:$4 sm:$0xff]   ;;  %v5724_v17 = vld [vmem:[%s6088_s14 + $0x468] ss:$16 sps:$4 sm:$0xff]  }
 0x140   : > { %3874 = vmatpush2.bf16.msra.mxu0 %v5664_v51  ;;  %v5727_v51 = vld [vmem:[%s6088_s14 + $0x668] ss:$16 sps:$4 sm:$0xff]  }
 0x141   : > { %3915 = vmatpush2.bf16.msra.mxu1 %v5667_v42  ;;  %3875 = vmatprep.subr.bf16.mxu0 %v5672_v18  ;;  %v5732_v42 = vld [vmem:[%s6088_s14 + $0x44c] ss:$16 sps:$4 sm:$0xff]  }
 0x142   : > { %3916 = vmatprep.subr.bf16.mxu1 %v5675_v21  ;;  %v5735_v18 = vld [vmem:[%s6088_s14 + $0x64c] ss:$16 sps:$4 sm:$0xff]   ;;  %v5730_v21 = vld [vmem:[%s6088_s14 + $0x448] ss:$16 sps:$4 sm:$0xff]  }
 0x144   : > { %3876 = vmatpush2.bf16.msra.mxu0 %v5670_v22  ;;  %v5733_v22 = vld [vmem:[%s6088_s14 + $0x648] ss:$16 sps:$4 sm:$0xff]  }
 0x145   : > { %3917 = vmatpush2.bf16.msra.mxu1 %v5673_v23  ;;  %3877 = vmatprep.subr.bf16.mxu0 %v5678_v24  ;;  %v5738_v23 = vld [vmem:[%s6088_s14 + $0x42c] ss:$16 sps:$4 sm:$0xff]  }
 0x146   : > { %3918 = vmatprep.subr.bf16.mxu1 %v5681_v27  ;;  %v5741_v24 = vld [vmem:[%s6088_s14 + $0x62c] ss:$16 sps:$4 sm:$0xff]   ;;  %v5736_v27 = vld [vmem:[%s6088_s14 + $0x428] ss:$16 sps:$4 sm:$0xff]  }
 0x148   : > { %3878 = vmatpush2.bf16.msra.mxu0 %v5676_v29  ;;  %v5739_v29 = vld [vmem:[%s6088_s14 + $0x628] ss:$16 sps:$4 sm:$0xff]  }
 0x149   : > { %3919 = vmatpush2.bf16.msra.mxu1 %v5679_v30  ;;  %3879 = vmatprep.subr.bf16.mxu0 %v5684_v31  ;;  %v5744_v30 = vld [vmem:[%s6088_s14 + $0x40c] ss:$16 sps:$4 sm:$0xff]  }
 0x14a   : > { %3920 = vmatprep.subr.bf16.mxu1 %v5687_v8  ;;  %v5747_v31 = vld [vmem:[%s6088_s14 + $0x60c] ss:$16 sps:$4 sm:$0xff]   ;;  %v5742_v8 = vld [vmem:[%s6088_s14 + $0x408] ss:$16 sps:$4 sm:$0xff]  }
 0x14c   : > { %3880 = vmatpush2.bf16.msra.mxu0 %v5682_v35  ;;  %v5745_v35 = vld [vmem:[%s6088_s14 + $0x608] ss:$16 sps:$4 sm:$0xff]  }
 0x14d   : > { %3921 = vmatpush2.bf16.msra.mxu1 %v5685_v36  ;;  %3881 = vmatprep.subr.bf16.mxu0 %v5690_v38  ;;  %v5750_v36 = vld [vmem:[%s6088_s14 + $0x5ec] ss:$16 sps:$4 sm:$0xff]  }
 0x14e   : > { %3922 = vmatprep.subr.bf16.mxu1 %v5693_v39  ;;  %v5753_v38 = vld [vmem:[%s6088_s14 + $0x7ec] ss:$16 sps:$4 sm:$0xff]   ;;  %v5748_v39 = vld [vmem:[%s6088_s14 + $0x5e8] ss:$16 sps:$4 sm:$0xff]  }
 0x150   : > { %3882 = vmatpush2.bf16.msra.mxu0 %v5688_v40  ;;  %v5751_v40 = vld [vmem:[%s6088_s14 + $0x7e8] ss:$16 sps:$4 sm:$0xff]  }
 0x151   : > { %3923 = vmatpush2.bf16.msra.mxu1 %v5691_v41  ;;  %3883 = vmatprep.subr.bf16.mxu0 %v5696_v34  ;;  %v5756_v41 = vld [vmem:[%s6088_s14 + $0x5cc] ss:$16 sps:$4 sm:$0xff]  }
 0x152   : > { %3924 = vmatprep.subr.bf16.mxu1 %v5699_v62  ;;  %v5759_v34 = vld [vmem:[%s6088_s14 + $0x7cc] ss:$16 sps:$4 sm:$0xff]   ;;  %v5754_v62 = vld [vmem:[%s6088_s14 + $0x5c8] ss:$16 sps:$4 sm:$0xff]  }
 0x154   : > { %3884 = vmatpush2.bf16.msra.mxu0 %v5694_v2  ;;  %v5757_v2 = vld [vmem:[%s6088_s14 + $0x7c8] ss:$16 sps:$4 sm:$0xff]  }
 0x155   : > { %3925 = vmatpush2.bf16.msra.mxu1 %v5697_v46  ;;  %3935 = vmatprep.subr.bf16.mxu0 %v5702_v47  ;;  %v5762_v46 = vld [vmem:[%s6088_s14 + $0x5ac] ss:$16 sps:$4 sm:$0xff]  }
 0x156   : > { %3976 = vmatprep.subr.bf16.mxu1 %v5705_v48  ;;  %v5765_v47 = vld [vmem:[%s6088_s14 + $0x7ac] ss:$16 sps:$4 sm:$0xff]   ;;  %v5760_v48 = vld [vmem:[%s6088_s14 + $0x5a8] ss:$16 sps:$4 sm:$0xff]  }
 0x157   : > { %v3641_v55 = vpop.f32.mrf.mxu0  ;;  %3886 = vmatmul.mubr.bf16.vlgmr.msra.gmra.mxu0 %v6176_v15 }
 0x158   : > { %v3682_v37 = vpop.f32.mrf.mxu1  ;;  %3927 = vmatmul.mubr.bf16.vlgmr.msra.gmra.mxu1 %v6186_v20  ;;  %v3642_v58 = vadd.f32 %v3641_v55, %v6458_v26  ;;  %3936 = vmatpush1.bf16.msra.mxu0 %v5700_v49  ;;  %v5763_v49 = vld [vmem:[%s6088_s14 + $0x7a8] ss:$16 sps:$4 sm:$0xff]  }
 0x159   : > { %3977 = vmatpush1.bf16.msra.mxu1 %v5703_v52  ;;  %v3643_v63 = vpop.f32.mrf.mxu0  ;;  %3937 = vmatprep.subr.bf16.mxu0 %v5708_v53  ;;  %v5768_v52 = vld [vmem:[%s6088_s14 + $0x58c] ss:$16 sps:$4 sm:$0xff]   ;;  %v5769_v55 = vld [vmem:[%s6088_s14 + $0x788] ss:$16 sps:$4 sm:$0xff]  }
 0x15a   : > { %v3684_v0 = vpop.f32.mrf.mxu1  ;;  %3978 = vmatprep.subr.bf16.mxu1 %v5711_v54  ;;  %v6533_v4 = vadd.f32 %v3682_v37, %v3642_v58  ;;  %v3644_v15 = vadd.f32 %v3643_v63, %v6462_v33  ;;  %3967 = vmatprep.mubr.bf16.mxu0 %v6182_v19  ;;  %v5720_v19 = vld [vmem:[%s6088_s14 + $0x48c] ss:$16 sps:$4 sm:$0xff]   ;;  %v5718_v33 = vld [vmem:[%s6088_s14 + $0x488] ss:$16 sps:$4 sm:$0xff]  }
 0x15b   : > { %4008 = vmatprep.mubr.bf16.mxu1 %v6194_v25  ;;  %v3645_v20 = vpop.f32.mrf.mxu0  ;;  %v5723_v25 = vld [vmem:[%s6088_s14 + $0x68c] ss:$16 sps:$4 sm:$0xff]   ;;  %v5766_v54 = vld [vmem:[%s6088_s14 + $0x588] ss:$16 sps:$4 sm:$0xff]  }
 0x15c   : > { %v3686_v26 = vpop.f32.mrf.mxu1  ;;  %v6538_v5 = vadd.f32 %v3684_v0, %v3644_v15  ;;  %3938 = vmatpush1.bf16.msra.mxu0 %v5706_v59  ;;  %v5771_v53 = vld [vmem:[%s6088_s14 + $0x78c] ss:$16 sps:$4 sm:$0xff]   ;;  %v5772_v59 = vld [vmem:[%s6088_s14 + $0x568] ss:$16 sps:$4 sm:$0xff]  }
 0x15d   : > { %3979 = vmatpush1.bf16.msra.mxu1 %v5709_v60  ;;  %v3646_v9 = vpop.f32.mrf.mxu0  ;;  %3939 = vmatprep.subr.bf16.mxu0 %v5714_v1  ;;  %v5774_v37 = vld [vmem:[%s6088_s14 + $0x56c] ss:$16 sps:$4 sm:$0xff]   ;;  %v5775_v60 = vld [vmem:[%s6088_s14 + $0x768] ss:$16 sps:$4 sm:$0xff]  }
 0x15e   : > { %v3687_v11 = vpop.f32.mrf.mxu1  ;;  %3980 = vmatprep.subr.bf16.mxu1 %v5717_v3  ;;  %v5777_v58 = vld [vmem:[%s6088_s14 + $0x76c] ss:$16 sps:$4 sm:$0xff]   ;;  %v5778_v1 = vld [vmem:[%s6088_s14 + $0x548] ss:$16 sps:$4 sm:$0xff]  }
 0x15f   : > { %v5780_v63 = vld [vmem:[%s6088_s14 + $0x54c] ss:$16 sps:$4 sm:$0xff]   ;;  %v5781_v3 = vld [vmem:[%s6088_s14 + $0x748] ss:$16 sps:$4 sm:$0xff]  }
 0x160   : > { %3940 = vmatpush1.bf16.msra.mxu0 %v5712_v6  ;;  %v5783_v0 = vld [vmem:[%s6088_s14 + $0x74c] ss:$16 sps:$4 sm:$0xff]   ;;  %v5784_v26 = vld [vmem:[%s6088_s14 + $0x528] ss:$16 sps:$4 sm:$0xff]  }
 0x161   : > { %3981 = vmatpush1.bf16.msra.mxu1 %v5715_v7  ;;  %3941 = vmatprep.subr.bf16.mxu0 %v5720_v19  ;;  %v5786_v15 = vld [vmem:[%s6088_s14 + $0x52c] ss:$16 sps:$4 sm:$0xff]   ;;  %v5787_v6 = vld [vmem:[%s6088_s14 + $0x728] ss:$16 sps:$4 sm:$0xff]  }
 0x162   : > { %3982 = vmatprep.subr.bf16.mxu1 %v5723_v25  ;;  %v5789_v20 = vld [vmem:[%s6088_s14 + $0x72c] ss:$16 sps:$4 sm:$0xff]   ;;  %v5790_v11 = vld [vmem:[%s6088_s14 + $0x508] ss:$16 sps:$4 sm:$0xff]  }
 0x163   : > { %v5792_v7 = vld [vmem:[%s6088_s14 + $0x50c] ss:$16 sps:$4 sm:$0xff]   ;;  %v5793_v19 = vld [vmem:[%s6088_s14 + $0x708] ss:$16 sps:$4 sm:$0xff]  }
 0x164   : > { %3942 = vmatpush1.bf16.msra.mxu0 %v5718_v33  ;;  %v5795_v9 = vld [vmem:[%s6088_s14 + $0x70c] ss:$16 sps:$4 sm:$0xff]  }
 0x165   : > { %3983 = vmatpush1.bf16.msra.mxu1 %v5721_v12  ;;  %3943 = vmatprep.subr.bf16.mxu0 %v5726_v13  ;;  %v5798_v25 = vld [vmem:[%s6088_s14 + $0x8ec] ss:$16 sps:$4 sm:$0xff]   ;;  %v5796_v12 = vld [vmem:[%s6088_s14 + $0x8e8] ss:$16 sps:$4 sm:$0xff]  }
 0x166   : > { %3984 = vmatprep.subr.bf16.mxu1 %v5729_v14  ;;  %v5801_v33 = vld [vmem:[%s6088_s14 + $0xaec] ss:$16 sps:$4 sm:$0xff]   ;;  %v5799_v13 = vld [vmem:[%s6088_s14 + $0xae8] ss:$16 sps:$4 sm:$0xff]  }
 0x167   : > { %v5804_v14 = vld [vmem:[%s6088_s14 + $0x8cc] ss:$16 sps:$4 sm:$0xff]  }
 0x168   : > { %3944 = vmatpush1.bf16.msra.mxu0 %v5724_v17  ;;  %v5807_v17 = vld [vmem:[%s6088_s14 + $0xacc] ss:$16 sps:$4 sm:$0xff]  }
 0x169   : > { %3985 = vmatpush1.bf16.msra.mxu1 %v5727_v51  ;;  %3945 = vmatprep.subr.bf16.mxu0 %v5732_v42 }
 0x16a   : > { %3986 = vmatprep.subr.bf16.mxu1 %v5735_v18 }
 0x16c   : > { %3946 = vmatpush1.bf16.msra.mxu0 %v5730_v21  ;;  %v5802_v21 = vld [vmem:[%s6088_s14 + $0x8c8] ss:$16 sps:$4 sm:$0xff]  }
 0x16d   : > { %3987 = vmatpush1.bf16.msra.mxu1 %v5733_v22  ;;  %3947 = vmatprep.subr.bf16.mxu0 %v5738_v23  ;;  %v5805_v22 = vld [vmem:[%s6088_s14 + $0xac8] ss:$16 sps:$4 sm:$0xff]  }
 0x16e   : > { %3988 = vmatprep.subr.bf16.mxu1 %v5741_v24 }
 0x170   : > { %3948 = vmatpush1.bf16.msra.mxu0 %v5736_v27  ;;  %v5810_v27 = vld [vmem:[%s6088_s14 + $0x8ac] ss:$16 sps:$4 sm:$0xff]  }
 0x171   : > { %3989 = vmatpush1.bf16.msra.mxu1 %v5739_v29  ;;  %3949 = vmatprep.subr.bf16.mxu0 %v5744_v30  ;;  %v5813_v29 = vld [vmem:[%s6088_s14 + $0xaac] ss:$16 sps:$4 sm:$0xff]  }
 0x172   : > { %3990 = vmatprep.subr.bf16.mxu1 %v5747_v31 }
 0x174   : > { %3950 = vmatpush1.bf16.msra.mxu0 %v5742_v8  ;;  %v5808_v8 = vld [vmem:[%s6088_s14 + $0x8a8] ss:$16 sps:$4 sm:$0xff]  }
 0x175   : > { %3991 = vmatpush1.bf16.msra.mxu1 %v5745_v35  ;;  %3951 = vmatprep.subr.bf16.mxu0 %v5750_v36  ;;  %v5811_v35 = vld [vmem:[%s6088_s14 + $0xaa8] ss:$16 sps:$4 sm:$0xff]  }
 0x176   : > { %3992 = vmatprep.subr.bf16.mxu1 %v5753_v38 }
 0x178   : > { %3952 = vmatpush2.bf16.msra.mxu0 %v5748_v39  ;;  %v5817_v39 = vld [vmem:[%s6088_s14 + $0xa88] ss:$16 sps:$4 sm:$0xff]  }
 0x179   : > { %3993 = vmatpush2.bf16.msra.mxu1 %v5751_v40  ;;  %3953 = vmatprep.subr.bf16.mxu0 %v5756_v41  ;;  %v5822_v40 = vld [vmem:[%s6088_s14 + $0x86c] ss:$16 sps:$4 sm:$0xff]  }
 0x17a   : > { %3994 = vmatprep.subr.bf16.mxu1 %v5759_v34  ;;  %v5825_v41 = vld [vmem:[%s6088_s14 + $0xa6c] ss:$16 sps:$4 sm:$0xff]   ;;  %v5820_v34 = vld [vmem:[%s6088_s14 + $0x868] ss:$16 sps:$4 sm:$0xff]  }
 0x17c   : > { %3954 = vmatpush2.bf16.msra.mxu0 %v5754_v62  ;;  %v5823_v62 = vld [vmem:[%s6088_s14 + $0xa68] ss:$16 sps:$4 sm:$0xff]  }
 0x17d   : > { %3995 = vmatpush2.bf16.msra.mxu1 %v5757_v2  ;;  %3955 = vmatprep.subr.bf16.mxu0 %v5762_v46  ;;  %v5828_v2 = vld [vmem:[%s6088_s14 + $0x84c] ss:$16 sps:$4 sm:$0xff]  }
 0x17e   : > { %3996 = vmatprep.subr.bf16.mxu1 %v5765_v47  ;;  %v5831_v46 = vld [vmem:[%s6088_s14 + $0xa4c] ss:$16 sps:$4 sm:$0xff]   ;;  %v5826_v47 = vld [vmem:[%s6088_s14 + $0x848] ss:$16 sps:$4 sm:$0xff]  }
 0x180   : > { %3956 = vmatpush2.bf16.msra.mxu0 %v5760_v48  ;;  %v5829_v48 = vld [vmem:[%s6088_s14 + $0xa48] ss:$16 sps:$4 sm:$0xff]  }
 0x181   : > { %3997 = vmatpush2.bf16.msra.mxu1 %v5763_v49  ;;  %3957 = vmatprep.subr.bf16.mxu0 %v5768_v52  ;;  %v5834_v49 = vld [vmem:[%s6088_s14 + $0x82c] ss:$16 sps:$4 sm:$0xff]  }
 0x182   : > { %3998 = vmatprep.subr.bf16.mxu1 %v5771_v53  ;;  %v5837_v52 = vld [vmem:[%s6088_s14 + $0xa2c] ss:$16 sps:$4 sm:$0xff]   ;;  %v5832_v53 = vld [vmem:[%s6088_s14 + $0x828] ss:$16 sps:$4 sm:$0xff]  }
 0x184   : > { %3958 = vmatpush2.bf16.msra.mxu0 %v5766_v54  ;;  %v5835_v54 = vld [vmem:[%s6088_s14 + $0xa28] ss:$16 sps:$4 sm:$0xff]  }
 0x185   : > { %3999 = vmatpush2.bf16.msra.mxu1 %v5769_v55  ;;  %3959 = vmatprep.subr.bf16.mxu0 %v5774_v37  ;;  %v5840_v55 = vld [vmem:[%s6088_s14 + $0x80c] ss:$16 sps:$4 sm:$0xff]  }
 0x186   : > { %4000 = vmatprep.subr.bf16.mxu1 %v5777_v58  ;;  %v5843_v37 = vld [vmem:[%s6088_s14 + $0xa0c] ss:$16 sps:$4 sm:$0xff]   ;;  %v5838_v58 = vld [vmem:[%s6088_s14 + $0x808] ss:$16 sps:$4 sm:$0xff]  }
 0x188   : > { %3960 = vmatpush2.bf16.msra.mxu0 %v5772_v59  ;;  %v5841_v59 = vld [vmem:[%s6088_s14 + $0xa08] ss:$16 sps:$4 sm:$0xff]  }
 0x189   : > { %4001 = vmatpush2.bf16.msra.mxu1 %v5775_v60  ;;  %3961 = vmatprep.subr.bf16.mxu0 %v5780_v63  ;;  %v5846_v60 = vld [vmem:[%s6088_s14 + $0x9ec] ss:$16 sps:$4 sm:$0xff]  }
 0x18a   : > { %4002 = vmatprep.subr.bf16.mxu1 %v5783_v0  ;;  %v5849_v63 = vld [vmem:[%s6088_s14 + $0xbec] ss:$16 sps:$4 sm:$0xff]   ;;  %v5844_v0 = vld [vmem:[%s6088_s14 + $0x9e8] ss:$16 sps:$4 sm:$0xff]  }
 0x18c   : > { %3962 = vmatpush2.bf16.msra.mxu0 %v5778_v1  ;;  %v5847_v1 = vld [vmem:[%s6088_s14 + $0xbe8] ss:$16 sps:$4 sm:$0xff]  }
 0x18d   : > { %4003 = vmatpush2.bf16.msra.mxu1 %v5781_v3  ;;  %3963 = vmatprep.subr.bf16.mxu0 %v5786_v15  ;;  %v5852_v3 = vld [vmem:[%s6088_s14 + $0x9cc] ss:$16 sps:$4 sm:$0xff]  }
 0x18e   : > { %4004 = vmatprep.subr.bf16.mxu1 %v5789_v20  ;;  %v5855_v15 = vld [vmem:[%s6088_s14 + $0xbcc] ss:$16 sps:$4 sm:$0xff]   ;;  %v5850_v20 = vld [vmem:[%s6088_s14 + $0x9c8] ss:$16 sps:$4 sm:$0xff]  }
 0x190   : > { %3964 = vmatpush2.bf16.msra.mxu0 %v5784_v26  ;;  %v5853_v26 = vld [vmem:[%s6088_s14 + $0xbc8] ss:$16 sps:$4 sm:$0xff]  }
 0x191   : > { %4005 = vmatpush2.bf16.msra.mxu1 %v5787_v6  ;;  %3965 = vmatprep.subr.bf16.mxu0 %v5792_v7  ;;  %v5858_v6 = vld [vmem:[%s6088_s14 + $0x9ac] ss:$16 sps:$4 sm:$0xff]  }
 0x192   : > { %4006 = vmatprep.subr.bf16.mxu1 %v5795_v9  ;;  %v5861_v7 = vld [vmem:[%s6088_s14 + $0xbac] ss:$16 sps:$4 sm:$0xff]   ;;  %v5856_v9 = vld [vmem:[%s6088_s14 + $0x9a8] ss:$16 sps:$4 sm:$0xff]  }
 0x194   : > { %3966 = vmatpush2.bf16.msra.mxu0 %v5790_v11  ;;  %v5859_v11 = vld [vmem:[%s6088_s14 + $0xba8] ss:$16 sps:$4 sm:$0xff]  }
 0x195   : > { %4007 = vmatpush2.bf16.msra.mxu1 %v5793_v19  ;;  %4017 = vmatprep.subr.bf16.mxu0 %v5798_v25  ;;  %v5864_v19 = vld [vmem:[%s6088_s14 + $0x98c] ss:$16 sps:$4 sm:$0xff]  }
 0x196   : > { %4058 = vmatprep.subr.bf16.mxu1 %v5801_v33  ;;  %v5867_v25 = vld [vmem:[%s6088_s14 + $0xb8c] ss:$16 sps:$4 sm:$0xff]   ;;  %v5862_v33 = vld [vmem:[%s6088_s14 + $0x988] ss:$16 sps:$4 sm:$0xff]  }
 0x197   : > { %v3723_v51 = vpop.f32.mrf.mxu0  ;;  %3968 = vmatmul.mubr.bf16.vlgmr.msra.gmra.mxu0 %v6259_v28 }
 0x198   : > { %v3764_v42 = vpop.f32.mrf.mxu1  ;;  %4009 = vmatmul.mubr.bf16.vlgmr.msra.gmra.mxu1 %v6266_v32  ;;  %v3724_v18 = vadd.f32 %v3723_v51, %v6533_v4  ;;  %4018 = vmatpush1.bf16.msra.mxu0 %v5796_v12  ;;  %v5865_v12 = vld [vmem:[%s6088_s14 + $0xb88] ss:$16 sps:$4 sm:$0xff]  }
 0x199   : > { %4059 = vmatpush1.bf16.msra.mxu1 %v5799_v13  ;;  %v3725_v23 = vpop.f32.mrf.mxu0  ;;  %4019 = vmatprep.subr.bf16.mxu0 %v5804_v14  ;;  %v5870_v13 = vld [vmem:[%s6088_s14 + $0x96c] ss:$16 sps:$4 sm:$0xff]   ;;  %v5871_v51 = vld [vmem:[%s6088_s14 + $0xb68] ss:$16 sps:$4 sm:$0xff]  }
 0x19a   : > { %v3766_v24 = vpop.f32.mrf.mxu1  ;;  %4060 = vmatprep.subr.bf16.mxu1 %v5807_v17  ;;  %v6607_v30 = vadd.f32 %v3764_v42, %v3724_v18  ;;  %v3726_v28 = vadd.f32 %v3725_v23, %v6538_v5  ;;  %4049 = vmatprep.mubr.bf16.mxu0 %v6288_v43  ;;  %v5816_v43 = vld [vmem:[%s6088_s14 + $0x88c] ss:$16 sps:$4 sm:$0xff]   ;;  %v5814_v5 = vld [vmem:[%s6088_s14 + $0x888] ss:$16 sps:$4 sm:$0xff]  }
 0x19b   : > { %4090 = vmatprep.mubr.bf16.mxu1 %v6293_v44  ;;  %v3727_v32 = vpop.f32.mrf.mxu0  ;;  %v5819_v44 = vld [vmem:[%s6088_s14 + $0xa8c] ss:$16 sps:$4 sm:$0xff]   ;;  %v5868_v17 = vld [vmem:[%s6088_s14 + $0x968] ss:$16 sps:$4 sm:$0xff]  }
 0x19c   : > { %v3768_v4 = vpop.f32.mrf.mxu1  ;;  %v6612_v31 = vadd.f32 %v3766_v24, %v3726_v28  ;;  %4020 = vmatpush1.bf16.msra.mxu0 %v5802_v21  ;;  %v5873_v14 = vld [vmem:[%s6088_s14 + $0xb6c] ss:$16 sps:$4 sm:$0xff]   ;;  %v5874_v21 = vld [vmem:[%s6088_s14 + $0x948] ss:$16 sps:$4 sm:$0xff]  }
 0x19d   : > { %4061 = vmatpush1.bf16.msra.mxu1 %v5805_v22  ;;  %v3728_v36 = vpop.f32.mrf.mxu0  ;;  %4021 = vmatprep.subr.bf16.mxu0 %v5810_v27  ;;  %v5876_v42 = vld [vmem:[%s6088_s14 + $0x94c] ss:$16 sps:$4 sm:$0xff]   ;;  %v5877_v22 = vld [vmem:[%s6088_s14 + $0xb48] ss:$16 sps:$4 sm:$0xff]  }
 0x19e   : > { %v3769_v38 = vpop.f32.mrf.mxu1  ;;  %4062 = vmatprep.subr.bf16.mxu1 %v5813_v29  ;;  %v5879_v18 = vld [vmem:[%s6088_s14 + $0xb4c] ss:$16 sps:$4 sm:$0xff]   ;;  %v5880_v27 = vld [vmem:[%s6088_s14 + $0x928] ss:$16 sps:$4 sm:$0xff]  }
 0x19f   : > { %v5882_v23 = vld [vmem:[%s6088_s14 + $0x92c] ss:$16 sps:$4 sm:$0xff]   ;;  %v5883_v29 = vld [vmem:[%s6088_s14 + $0xb28] ss:$16 sps:$4 sm:$0xff]  }
 0x1a0   : > { %4022 = vmatpush1.bf16.msra.mxu0 %v5808_v8  ;;  %v5885_v24 = vld [vmem:[%s6088_s14 + $0xb2c] ss:$16 sps:$4 sm:$0xff]   ;;  %v5886_v4 = vld [vmem:[%s6088_s14 + $0x908] ss:$16 sps:$4 sm:$0xff]  }
 0x1a1   : > { %4063 = vmatpush1.bf16.msra.mxu1 %v5811_v35  ;;  %4023 = vmatprep.subr.bf16.mxu0 %v5816_v43  ;;  %v5888_v28 = vld [vmem:[%s6088_s14 + $0x90c] ss:$16 sps:$4 sm:$0xff]   ;;  %v5889_v8 = vld [vmem:[%s6088_s14 + $0xb08] ss:$16 sps:$4 sm:$0xff]  }
 0x1a2   : > { %4064 = vmatprep.subr.bf16.mxu1 %v5819_v44  ;;  %v5891_v32 = vld [vmem:[%s6088_s14 + $0xb0c] ss:$16 sps:$4 sm:$0xff]   ;;  %v5892_v38 = vld [vmem:[%s6088_s14 + $0xce8] ss:$16 sps:$4 sm:$0xff]  }
 0x1a3   : > { %v5894_v35 = vld [vmem:[%s6088_s14 + $0xcec] ss:$16 sps:$4 sm:$0xff]   ;;  %v5895_v43 = vld [vmem:[%s6088_s14 + $0xee8] ss:$16 sps:$4 sm:$0xff]  }
 0x1a4   : > { %4024 = vmatpush1.bf16.msra.mxu0 %v5814_v5  ;;  %v5897_v36 = vld [vmem:[%s6088_s14 + $0xeec] ss:$16 sps:$4 sm:$0xff]  }
 0x1a5   : > { %4065 = vmatpush1.bf16.msra.mxu1 %v5817_v39  ;;  %4025 = vmatprep.subr.bf16.mxu0 %v5822_v40  ;;  %v5900_v44 = vld [vmem:[%s6088_s14 + $0xccc] ss:$16 sps:$4 sm:$0xff]  }
 0x1a6   : > { %4066 = vmatprep.subr.bf16.mxu1 %v5825_v41  ;;  %v5903_v5 = vld [vmem:[%s6088_s14 + $0xecc] ss:$16 sps:$4 sm:$0xff]  }
 0x1a8   : > { %4026 = vmatpush1.bf16.msra.mxu0 %v5820_v34  ;;  %v5898_v34 = vld [vmem:[%s6088_s14 + $0xcc8] ss:$16 sps:$4 sm:$0xff]  }
 0x1a9   : > { %4067 = vmatpush1.bf16.msra.mxu1 %v5823_v62  ;;  %4027 = vmatprep.subr.bf16.mxu0 %v5828_v2  ;;  %v5901_v62 = vld [vmem:[%s6088_s14 + $0xec8] ss:$16 sps:$4 sm:$0xff]  }
 0x1aa   : > { %4068 = vmatprep.subr.bf16.mxu1 %v5831_v46 }
 0x1ac   : > { %4028 = vmatpush1.bf16.msra.mxu0 %v5826_v47  ;;  %v5906_v47 = vld [vmem:[%s6088_s14 + $0xcac] ss:$16 sps:$4 sm:$0xff]  }
 0x1ad   : > { %4069 = vmatpush1.bf16.msra.mxu1 %v5829_v48  ;;  %4029 = vmatprep.subr.bf16.mxu0 %v5834_v49  ;;  %v5909_v48 = vld [vmem:[%s6088_s14 + $0xeac] ss:$16 sps:$4 sm:$0xff]  }
 0x1ae   : > { %4070 = vmatprep.subr.bf16.mxu1 %v5837_v52 }
 0x1b0   : > { %4030 = vmatpush1.bf16.msra.mxu0 %v5832_v53  ;;  %v5904_v53 = vld [vmem:[%s6088_s14 + $0xca8] ss:$16 sps:$4 sm:$0xff]  }
 0x1b1   : > { %4071 = vmatpush1.bf16.msra.mxu1 %v5835_v54  ;;  %4031 = vmatprep.subr.bf16.mxu0 %v5840_v55  ;;  %v5907_v54 = vld [vmem:[%s6088_s14 + $0xea8] ss:$16 sps:$4 sm:$0xff]  }
 0x1b2   : > { %4072 = vmatprep.subr.bf16.mxu1 %v5843_v37 }
 0x1b4   : > { %4032 = vmatpush1.bf16.msra.mxu0 %v5838_v58  ;;  %v5910_v58 = vld [vmem:[%s6088_s14 + $0xc88] ss:$16 sps:$4 sm:$0xff]  }
 0x1b5   : > { %4073 = vmatpush1.bf16.msra.mxu1 %v5841_v59  ;;  %4033 = vmatprep.subr.bf16.mxu0 %v5846_v60  ;;  %v5913_v59 = vld [vmem:[%s6088_s14 + $0xe88] ss:$16 sps:$4 sm:$0xff]   ;;  %v5918_v60 = vld [vmem:[%s6088_s14 + $0xc6c] ss:$16 sps:$4 sm:$0xff]  }
 0x1b6   : > { %4074 = vmatprep.subr.bf16.mxu1 %v5849_v63  ;;  %v5921_v63 = vld [vmem:[%s6088_s14 + $0xe6c] ss:$16 sps:$4 sm:$0xff]  }
 0x1b8   : > { %4034 = vmatpush2.bf16.msra.mxu0 %v5844_v0  ;;  %v5916_v0 = vld [vmem:[%s6088_s14 + $0xc68] ss:$16 sps:$4 sm:$0xff]  }
 0x1b9   : > { %4075 = vmatpush2.bf16.msra.mxu1 %v5847_v1  ;;  %4035 = vmatprep.subr.bf16.mxu0 %v5852_v3  ;;  %v5919_v1 = vld [vmem:[%s6088_s14 + $0xe68] ss:$16 sps:$4 sm:$0xff]   ;;  %v5924_v3 = vld [vmem:[%s6088_s14 + $0xc4c] ss:$16 sps:$4 sm:$0xff]  }
 0x1ba   : > { %4076 = vmatprep.subr.bf16.mxu1 %v5855_v15  ;;  %v5927_v15 = vld [vmem:[%s6088_s14 + $0xe4c] ss:$16 sps:$4 sm:$0xff]  }
 0x1bc   : > { %4036 = vmatpush2.bf16.msra.mxu0 %v5850_v20  ;;  %v5922_v20 = vld [vmem:[%s6088_s14 + $0xc48] ss:$16 sps:$4 sm:$0xff]  }
 0x1bd   : > { %4077 = vmatpush2.bf16.msra.mxu1 %v5853_v26  ;;  %4037 = vmatprep.subr.bf16.mxu0 %v5858_v6  ;;  %v5925_v26 = vld [vmem:[%s6088_s14 + $0xe48] ss:$16 sps:$4 sm:$0xff]   ;;  %v5930_v6 = vld [vmem:[%s6088_s14 + $0xc2c] ss:$16 sps:$4 sm:$0xff]  }
 0x1be   : > { %4078 = vmatprep.subr.bf16.mxu1 %v5861_v7  ;;  %v5933_v7 = vld [vmem:[%s6088_s14 + $0xe2c] ss:$16 sps:$4 sm:$0xff]  }
 0x1c0   : > { %4038 = vmatpush2.bf16.msra.mxu0 %v5856_v9  ;;  %v5928_v9 = vld [vmem:[%s6088_s14 + $0xc28] ss:$16 sps:$4 sm:$0xff]  }
 0x1c1   : > { %4079 = vmatpush2.bf16.msra.mxu1 %v5859_v11  ;;  %4039 = vmatprep.subr.bf16.mxu0 %v5864_v19  ;;  %v5931_v11 = vld [vmem:[%s6088_s14 + $0xe28] ss:$16 sps:$4 sm:$0xff]   ;;  %v5936_v19 = vld [vmem:[%s6088_s14 + $0xc0c] ss:$16 sps:$4 sm:$0xff]  }
 0x1c2   : > { %4080 = vmatprep.subr.bf16.mxu1 %v5867_v25  ;;  %v5939_v25 = vld [vmem:[%s6088_s14 + $0xe0c] ss:$16 sps:$4 sm:$0xff]  }
 0x1c4   : > { %4040 = vmatpush2.bf16.msra.mxu0 %v5862_v33  ;;  %v5934_v33 = vld [vmem:[%s6088_s14 + $0xc08] ss:$16 sps:$4 sm:$0xff]  }
 0x1c5   : > { %4081 = vmatpush2.bf16.msra.mxu1 %v5865_v12  ;;  %4041 = vmatprep.subr.bf16.mxu0 %v5870_v13  ;;  %v5937_v12 = vld [vmem:[%s6088_s14 + $0xe08] ss:$16 sps:$4 sm:$0xff]   ;;  %v5942_v13 = vld [vmem:[%s6088_s14 + $0xdec] ss:$16 sps:$4 sm:$0xff]  }
 0x1c6   : > { %4082 = vmatprep.subr.bf16.mxu1 %v5873_v14  ;;  %v5945_v14 = vld [vmem:[%s6088_s14 + $0xfec] ss:$16 sps:$4 sm:$0xff]  }
 0x1c8   : > { %4042 = vmatpush2.bf16.msra.mxu0 %v5868_v17  ;;  %v5940_v17 = vld [vmem:[%s6088_s14 + $0xde8] ss:$16 sps:$4 sm:$0xff]  }
 0x1c9   : > { %4083 = vmatpush2.bf16.msra.mxu1 %v5871_v51  ;;  %4043 = vmatprep.subr.bf16.mxu0 %v5876_v42  ;;  %v5943_v51 = vld [vmem:[%s6088_s14 + $0xfe8] ss:$16 sps:$4 sm:$0xff]   ;;  %v5948_v42 = vld [vmem:[%s6088_s14 + $0xdcc] ss:$16 sps:$4 sm:$0xff]  }
 0x1ca   : > { %4084 = vmatprep.subr.bf16.mxu1 %v5879_v18  ;;  %v5951_v18 = vld [vmem:[%s6088_s14 + $0xfcc] ss:$16 sps:$4 sm:$0xff]  }
 0x1cc   : > { %4044 = vmatpush2.bf16.msra.mxu0 %v5874_v21  ;;  %v5946_v21 = vld [vmem:[%s6088_s14 + $0xdc8] ss:$16 sps:$4 sm:$0xff]  }
 0x1cd   : > { %4085 = vmatpush2.bf16.msra.mxu1 %v5877_v22  ;;  %4045 = vmatprep.subr.bf16.mxu0 %v5882_v23  ;;  %v5949_v22 = vld [vmem:[%s6088_s14 + $0xfc8] ss:$16 sps:$4 sm:$0xff]   ;;  %v5954_v23 = vld [vmem:[%s6088_s14 + $0xdac] ss:$16 sps:$4 sm:$0xff]  }
 0x1ce   : > { %4086 = vmatprep.subr.bf16.mxu1 %v5885_v24  ;;  %v5957_v24 = vld [vmem:[%s6088_s14 + $0xfac] ss:$16 sps:$4 sm:$0xff]  }
 0x1d0   : > { %4046 = vmatpush2.bf16.msra.mxu0 %v5880_v27  ;;  %v5952_v27 = vld [vmem:[%s6088_s14 + $0xda8] ss:$16 sps:$4 sm:$0xff]  }
 0x1d1   : > { %4087 = vmatpush2.bf16.msra.mxu1 %v5883_v29  ;;  %4047 = vmatprep.subr.bf16.mxu0 %v5888_v28  ;;  %v5955_v29 = vld [vmem:[%s6088_s14 + $0xfa8] ss:$16 sps:$4 sm:$0xff]   ;;  %v5960_v28 = vld [vmem:[%s6088_s14 + $0xd8c] ss:$16 sps:$4 sm:$0xff]  }
 0x1d2   : > { %4088 = vmatprep.subr.bf16.mxu1 %v5891_v32  ;;  %v5963_v32 = vld [vmem:[%s6088_s14 + $0xf8c] ss:$16 sps:$4 sm:$0xff]  }
 0x1d4   : > { %4048 = vmatpush2.bf16.msra.mxu0 %v5886_v4  ;;  %v5958_v4 = vld [vmem:[%s6088_s14 + $0xd88] ss:$16 sps:$4 sm:$0xff]  }
 0x1d5   : > { %4089 = vmatpush2.bf16.msra.mxu1 %v5889_v8  ;;  %4099 = vmatprep.subr.bf16.mxu0 %v5894_v35  ;;  %v5961_v8 = vld [vmem:[%s6088_s14 + $0xf88] ss:$16 sps:$4 sm:$0xff]   ;;  %v5966_v35 = vld [vmem:[%s6088_s14 + $0xd6c] ss:$16 sps:$4 sm:$0xff]  }
 0x1d6   : > { %4140 = vmatprep.subr.bf16.mxu1 %v5897_v36  ;;  %v5969_v36 = vld [vmem:[%s6088_s14 + $0xf6c] ss:$16 sps:$4 sm:$0xff]  }
 0x1d7   : > { %v3805_v39 = vpop.f32.mrf.mxu0  ;;  %4050 = vmatmul.mubr.bf16.vlgmr.msra.gmra.mxu0 %v6357_v50 }
 0x1d8   : > { %v3846_v40 = vpop.f32.mrf.mxu1  ;;  %4091 = vmatmul.mubr.bf16.vlgmr.msra.gmra.mxu1 %v6368_v57  ;;  %v3806_v41 = vadd.f32 %v3805_v39, %v6607_v30  ;;  %4100 = vmatpush1.bf16.msra.mxu0 %v5892_v38  ;;  %v5964_v38 = vld [vmem:[%s6088_s14 + $0xd68] ss:$16 sps:$4 sm:$0xff]  }
 0x1d9   : > { %4141 = vmatpush1.bf16.msra.mxu1 %v5895_v43  ;;  %v3807_v2 = vpop.f32.mrf.mxu0  ;;  %4101 = vmatprep.subr.bf16.mxu0 %v5900_v44  ;;  %v5967_v43 = vld [vmem:[%s6088_s14 + $0xf68] ss:$16 sps:$4 sm:$0xff]   ;;  %v5972_v44 = vld [vmem:[%s6088_s14 + $0xd4c] ss:$16 sps:$4 sm:$0xff]  }
 0x1da   : > { %v3848_v46 = vpop.f32.mrf.mxu1  ;;  %4142 = vmatprep.subr.bf16.mxu1 %v5903_v5  ;;  %v6681_v49 = vadd.f32 %v3846_v40, %v3806_v41  ;;  %v3808_v50 = vadd.f32 %v3807_v2, %v6612_v31  ;;  %4131 = vmatprep.mubr.bf16.mxu0 %v6364_v56  ;;  %v5912_v56 = vld [vmem:[%s6088_s14 + $0xc8c] ss:$16 sps:$4 sm:$0xff]   ;;  %v5970_v39 = vld [vmem:[%s6088_s14 + $0xd48] ss:$16 sps:$4 sm:$0xff]  }
 0x1db   : > { %4172 = vmatprep.mubr.bf16.mxu1 %v6376_v61  ;;  %v3809_v57 = vpop.f32.mrf.mxu0  ;;  %v5915_v61 = vld [vmem:[%s6088_s14 + $0xe8c] ss:$16 sps:$4 sm:$0xff]   ;;  %v5973_v40 = vld [vmem:[%s6088_s14 + $0xf48] ss:$16 sps:$4 sm:$0xff]  }
 0x1dc   : > { %v3850_v30 = vpop.f32.mrf.mxu1  ;;  %v6686_v52 = vadd.f32 %v3848_v46, %v3808_v50  ;;  %4102 = vmatpush1.bf16.msra.mxu0 %v5898_v34  ;;  %v5975_v5 = vld [vmem:[%s6088_s14 + $0xf4c] ss:$16 sps:$4 sm:$0xff]   ;;  %v5979_v2 = vld [vmem:[%s6088_s14 + $0xf28] ss:$16 sps:$4 sm:$0xff]  }
 0x1dd   : > { %4143 = vmatpush1.bf16.msra.mxu1 %v5901_v62  ;;  %v3810_v55 = vpop.f32.mrf.mxu0  ;;  %4103 = vmatprep.subr.bf16.mxu0 %v5906_v47  ;;  %v5978_v41 = vld [vmem:[%s6088_s14 + $0xd2c] ss:$16 sps:$4 sm:$0xff]   ;;  %v5976_v62 = vld [vmem:[%s6088_s14 + $0xd28] ss:$16 sps:$4 sm:$0xff]  }
 0x1de   : > { %v3851_v37 = vpop.f32.mrf.mxu1  ;;  %4144 = vmatprep.subr.bf16.mxu1 %v5909_v48  ;;  %v4185_v31 = vcombine.low %v6681_v49, %v6686_v52  ;;  %v5981_v34 = vld [vmem:[%s6088_s14 + $0xf2c] ss:$16 sps:$4 sm:$0xff]   ;;  %v5982_v48 = vld [vmem:[%s6088_s14 + $0xd08] ss:$16 sps:$4 sm:$0xff]  }
 0x1df   : > { %v5984_v46 = vld [vmem:[%s6088_s14 + $0xd0c] ss:$16 sps:$4 sm:$0xff]   ;;  %v5985_v50 = vld [vmem:[%s6088_s14 + $0xf08] ss:$16 sps:$4 sm:$0xff]  }
 0x1e0   : > { %4104 = vmatpush1.bf16.msra.mxu0 %v5904_v53  ;;  %v5987_v47 = vld [vmem:[%s6088_s14 + $0xf0c] ss:$16 sps:$4 sm:$0xff]  }
 0x1e1   : > { %4145 = vmatpush1.bf16.msra.mxu1 %v5907_v54  ;;  %4105 = vmatprep.subr.bf16.mxu0 %v5912_v56 }
 0x1e2   : > { %4146 = vmatprep.subr.bf16.mxu1 %v5915_v61 }
 0x1e4   : > { %4106 = vmatpush1.bf16.msra.mxu0 %v5910_v58 }
 0x1e5   : > { %4147 = vmatpush1.bf16.msra.mxu1 %v5913_v59  ;;  %4107 = vmatprep.subr.bf16.mxu0 %v5918_v60 }
 0x1e6   : > { %4148 = vmatprep.subr.bf16.mxu1 %v5921_v63 }
 0x1e8   : > { %4108 = vmatpush1.bf16.msra.mxu0 %v5916_v0 }
 0x1e9   : > { %4149 = vmatpush1.bf16.msra.mxu1 %v5919_v1  ;;  %4109 = vmatprep.subr.bf16.mxu0 %v5924_v3 }
 0x1ea   : > { %4150 = vmatprep.subr.bf16.mxu1 %v5927_v15 }
 0x1ec   : > { %4110 = vmatpush1.bf16.msra.mxu0 %v5922_v20 }
 0x1ed   : > { %4151 = vmatpush1.bf16.msra.mxu1 %v5925_v26  ;;  %4111 = vmatprep.subr.bf16.mxu0 %v5930_v6 }
 0x1ee   : > { %4152 = vmatprep.subr.bf16.mxu1 %v5933_v7 }
 0x1f0   : > { %4112 = vmatpush1.bf16.msra.mxu0 %v5928_v9 }
 0x1f1   : > { %4153 = vmatpush1.bf16.msra.mxu1 %v5931_v11  ;;  %4113 = vmatprep.subr.bf16.mxu0 %v5936_v19 }
 0x1f2   : > { %4154 = vmatprep.subr.bf16.mxu1 %v5939_v25 }
 0x1f4   : > { %4114 = vmatpush1.bf16.msra.mxu0 %v5934_v33 }
 0x1f5   : > { %4155 = vmatpush1.bf16.msra.mxu1 %v5937_v12  ;;  %4115 = vmatprep.subr.bf16.mxu0 %v5942_v13 }
 0x1f6   : > { %4156 = vmatprep.subr.bf16.mxu1 %v5945_v14 }
 0x1f8   : > { %4116 = vmatpush2.bf16.msra.mxu0 %v5940_v17 }
 0x1f9   : > { %4157 = vmatpush2.bf16.msra.mxu1 %v5943_v51  ;;  %4117 = vmatprep.subr.bf16.mxu0 %v5948_v42  ;;  %v6014_v42 = vmov 1983009808  }
 0x1fa   : > { %4158 = vmatprep.subr.bf16.mxu1 %v5951_v18  ;;  %v4188_v18 = vunpack.c.l.s4 %v6014_v42 }
 0x1fc   : > { %4118 = vmatpush2.bf16.msra.mxu0 %v5946_v21 }
 0x1fd   : > { %4159 = vmatpush2.bf16.msra.mxu1 %v5949_v22  ;;  %4119 = vmatprep.subr.bf16.mxu0 %v5954_v23 }
 0x1fe   : > { %4160 = vmatprep.subr.bf16.mxu1 %v5957_v24  ;;  %v4189_v24 = vunpack.c.0.s8 %v4188_v18 }
 0x200   : > { %4120 = vmatpush2.bf16.msra.mxu0 %v5952_v27 }
 0x201   : > { %4161 = vmatpush2.bf16.msra.mxu1 %v5955_v29  ;;  %4121 = vmatprep.subr.bf16.mxu0 %v5960_v28 }
 0x202   : > { %4162 = vmatprep.subr.bf16.mxu1 %v5963_v32 }
 0x204   : > { %4122 = vmatpush2.bf16.msra.mxu0 %v5958_v4 }
 0x205   : > { %4163 = vmatpush2.bf16.msra.mxu1 %v5961_v8  ;;  %4123 = vmatprep.subr.bf16.mxu0 %v5966_v35 }
 0x206   : > { %4164 = vmatprep.subr.bf16.mxu1 %v5969_v36  ;;  %v6747_v36 = vsub.s32 %v4189_v24, %v6130_v45 }
 0x208   : > { %4124 = vmatpush2.bf16.msra.mxu0 %v5964_v38 }
 0x209   : > { %4165 = vmatpush2.bf16.msra.mxu1 %v5967_v43  ;;  %4125 = vmatprep.subr.bf16.mxu0 %v5972_v44 }
 0x20a   : > { %4166 = vmatprep.subr.bf16.mxu1 %v5975_v5 }
 0x20c   : > { %4126 = vmatpush2.bf16.msra.mxu0 %v5970_v39 }
 0x20d   : > { %4167 = vmatpush2.bf16.msra.mxu1 %v5973_v40  ;;  %4127 = vmatprep.subr.bf16.mxu0 %v5978_v41  ;;  %v4193_v40 = vrot.slane %v4185_v31, %v6747_v36 }
 0x20e   : > { %4168 = vmatprep.subr.bf16.mxu1 %v5981_v34  ;;  %v334_v34 = vld [vmem:[#allocation2] sm:$0xff] }
 0x210   : > { %4128 = vmatpush2.bf16.msra.mxu0 %v5976_v62 }
 0x211   : > { %4169 = vmatpush2.bf16.msra.mxu1 %v5979_v2  ;;  %4129 = vmatprep.subr.bf16.mxu0 %v5984_v46 }
 0x212   : > { %4170 = vmatprep.subr.bf16.mxu1 %v5987_v47 }
 0x214   : > { %4130 = vmatpush2.bf16.msra.mxu0 %v5982_v48 }
 0x215   : > { %4171 = vmatpush2.bf16.msra.mxu1 %v5985_v50 }
 0x217   : > { %v3887_v57 = vpop.f32.mrf.mxu0  ;;  %4132 = vmatmul.mubr.bf16.vlgmr.msra.gmra.mxu0 %v6440_v10 }
 0x218   : > { %v3928_v30 = vpop.f32.mrf.mxu1  ;;  %4173 = vmatmul.mubr.bf16.vlgmr.msra.gmra.mxu1 %v6448_v16 }
 0x219   : > { %v3929_v53 = vadd.f32 %v3928_v30, %v3887_v57  ;;  %v3889_v54 = vpop.f32.mrf.mxu0 }
 0x21a   : > { %v3930_v55 = vpop.f32.mrf.mxu1 }
 0x21b   : > { %v3931_v37 = vadd.f32 %v3930_v55, %v3889_v54  ;;  %v3891_v56 = vpop.f32.mrf.mxu0 }
 0x21c   : > { %v3932_v61 = vpop.f32.mrf.mxu1 }
 0x21d   : > { %v3892_v58 = vpop.f32.mrf.mxu0 }
 0x21e   : > { %v3933_v59 = vpop.f32.mrf.mxu1 }
 0x257   : > { %v3969_v60 = vpop.f32.mrf.mxu0 }
 0x258   : > { %v4010_v63 = vpop.f32.mrf.mxu1  ;;  %v3970_v0 = vadd.f32 %v3969_v60, %v3929_v53 }
 0x259   : > { %v3971_v1 = vpop.f32.mrf.mxu0 }
 0x25a   : > { %v4012_v3 = vpop.f32.mrf.mxu1  ;;  %v4011_v15 = vadd.f32 %v4010_v63, %v3970_v0  ;;  %v3972_v20 = vadd.f32 %v3971_v1, %v3931_v37 }
 0x25b   : > { %v3973_v26 = vpop.f32.mrf.mxu0 }
 0x25c   : > { %v4014_v6 = vpop.f32.mrf.mxu1  ;;  %v4013_v10 = vadd.f32 %v4012_v3, %v3972_v20 }
 0x25d   : > { %v3974_v7 = vpop.f32.mrf.mxu0 }
 0x25e   : > { %v4015_v16 = vpop.f32.mrf.mxu1 }
 0x297   : > { %v4051_v9 = vpop.f32.mrf.mxu0 }
 0x298   : > { %v4092_v11 = vpop.f32.mrf.mxu1  ;;  %v4052_v19 = vadd.f32 %v4051_v9, %v4011_v15 }
 0x299   : > { %v4053_v25 = vpop.f32.mrf.mxu0 }
 0x29a   : > { %v4094_v33 = vpop.f32.mrf.mxu1  ;;  %v4093_v12 = vadd.f32 %v4092_v11, %v4052_v19  ;;  %v4054_v21 = vadd.f32 %v4053_v25, %v4013_v10 }
 0x29b   : > { %v4055_v13 = vpop.f32.mrf.mxu0 }
 0x29c   : > { %v4096_v14 = vpop.f32.mrf.mxu1  ;;  %v4095_v27 = vadd.f32 %v4094_v33, %v4054_v21 }
 0x29d   : > { %v4056_v17 = vpop.f32.mrf.mxu0 }
 0x29e   : > { %v4097_v51 = vpop.f32.mrf.mxu1 }
 0x2d7   : > { %v4133_v22 = vpop.f32.mrf.mxu0 }
 0x2d8   : > { %v4174_v23 = vpop.f32.mrf.mxu1  ;;  %v4134_v29 = vadd.f32 %v4133_v22, %v4093_v12 }
 0x2d9   : > { %v4135_v28 = vpop.f32.mrf.mxu0 }
 0x2da   : > { %v4176_v32 = vpop.f32.mrf.mxu1  ;;  %v4136_v4 = vadd.f32 %v4135_v28, %v4095_v27  ;;  %v4175_v38 = vadd.f32 %v4174_v23, %v4134_v29 }
 0x2db   : > { %v4137_v8 = vpop.f32.mrf.mxu0 }
 0x2dc   : > { %v4178_v35 = vpop.f32.mrf.mxu1  ;;  %v4177_v43 = vadd.f32 %v4176_v32, %v4136_v4 }
 0x2dd   : > { %v4138_v44 = vpop.f32.mrf.mxu0 }
 0x2de   : > { %v4179_v5 = vpop.f32.mrf.mxu1  ;;  %v4186_v39 = vcombine.low %v4175_v38, %v4177_v43 }
 0x2e0   : > { %v4200_v41 = vrot.slane %v4186_v39, %v6747_v36 }
 0x2e2   : > { %v4201_v62 = vcombine.low %v4193_v40, %v4200_v41  ;;  %4208 = sbr.rel (%p5185_p7) target bundleno = 1157 (0x485), region = 56 }
 0x2e4   : > { %v4203_v2 = vadd.f32 %v4201_v62, %v334_v34 }
 0x2e6   : > { %4204 = vst [vmem:[#allocation2] sm:$0xff] %v4203_v2 }
 0x2e7   : > { %v4281_v46 = vld [vmem:[%s7181_s3 + $0xf8] sm:$0xff]  ;;  %v4280_v49 = vld [vmem:[%s7181_s3 + $0xf0] sm:$0xff]  ;;  %v4279_v31 = vld [vmem:[%s7181_s3 + $0xe8] sm:$0xff]  ;;  %vm4574_vm3 = vcmask 1041408   ;;  %vm4588_vm4 = vcmask 1024  }
 0x2e8   : > { %v4345_v47 = vld [vmem:[%s7181_s3 + $0x2f8] sm:$0xff]  ;;  %4412 = vmatprep.subr.mxu0 %v4281_v46  ;;  %v4344_v52 = vld [vmem:[%s7181_s3 + $0x2f0] sm:$0xff]  ;;  %v4343_v48 = vld [vmem:[%s7181_s3 + $0x2e8] sm:$0xff] }
 0x2e9   : > { %4483 = vmatprep.subr.mxu1 %v4345_v47  ;;  %4413 = vmatpush1.msra.mxu0 %v4280_v49  ;;  %v4278_v50 = vld [vmem:[%s7181_s3 + $0xe0] sm:$0xff]  ;;  %v4277_v30 = vld [vmem:[%s7181_s3 + $0xd8] sm:$0xff]  ;;  %v4276_v54 = vld [vmem:[%s7181_s3 + $0xd0] sm:$0xff] }
 0x2ea   : > { %4484 = vmatpush1.msra.mxu1 %v4344_v52  ;;  %v4342_v57 = vld [vmem:[%s7181_s3 + $0x2e0] sm:$0xff]  ;;  %4414 = vmatprep.subr.mxu0 %v4279_v31  ;;  %v4341_v53 = vld [vmem:[%s7181_s3 + $0x2d8] sm:$0xff]  ;;  %v4340_v55 = vld [vmem:[%s7181_s3 + $0x2d0] sm:$0xff] }
 0x2eb   : > { %4485 = vmatprep.subr.mxu1 %v4343_v48  ;;  %4415 = vmatpush1.msra.mxu0 %v4278_v50  ;;  %v4275_v37 = vld [vmem:[%s7181_s3 + $0xc8] sm:$0xff]  ;;  %v4274_v61 = vld [vmem:[%s7181_s3 + $0xc0] sm:$0xff]  ;;  %v4273_v59 = vld [vmem:[%s7181_s3 + $0xb8] sm:$0xff] }
 0x2ec   : > { %4486 = vmatpush1.msra.mxu1 %v4342_v57  ;;  %v4339_v56 = vld [vmem:[%s7181_s3 + $0x2c8] sm:$0xff]  ;;  %4416 = vmatprep.subr.mxu0 %v4277_v30  ;;  %v4338_v58 = vld [vmem:[%s7181_s3 + $0x2c0] sm:$0xff]  ;;  %v4337_v60 = vld [vmem:[%s7181_s3 + $0x2b8] sm:$0xff] }
 0x2ed   : > { %4487 = vmatprep.subr.mxu1 %v4341_v53  ;;  %4417 = vmatpush1.msra.mxu0 %v4276_v54  ;;  %v4272_v63 = vld [vmem:[%s7181_s3 + $0xb0] sm:$0xff]  ;;  %v4271_v1 = vld [vmem:[%s7181_s3 + $0xa8] sm:$0xff]  ;;  %v4270_v15 = vld [vmem:[%s7181_s3 + $0xa0] sm:$0xff] }
 0x2ee   : > { %4488 = vmatpush1.msra.mxu1 %v4340_v55  ;;  %4418 = vmatprep.subr.mxu0 %v4275_v37  ;;  %v4336_v0 = vld [vmem:[%s7181_s3 + $0x2b0] sm:$0xff]  ;;  %v4335_v3 = vld [vmem:[%s7181_s3 + $0x2a8] sm:$0xff]  ;;  %v4334_v20 = vld [vmem:[%s7181_s3 + $0x2a0] sm:$0xff] }
 0x2ef   : > { %4489 = vmatprep.subr.mxu1 %v4339_v56  ;;  %4419 = vmatpush1.msra.mxu0 %v4274_v61  ;;  %v4269_v26 = vld [vmem:[%s7181_s3 + $0x98] sm:$0xff]  ;;  %v4268_v10 = vld [vmem:[%s7181_s3 + $0x90] sm:$0xff]  ;;  %v4267_v16 = vld [vmem:[%s7181_s3 + $0x88] sm:$0xff] }
 0x2f0   : > { %4490 = vmatpush1.msra.mxu1 %v4338_v58  ;;  %4420 = vmatprep.subr.mxu0 %v4273_v59  ;;  %v4333_v6 = vld [vmem:[%s7181_s3 + $0x298] sm:$0xff]  ;;  %v4332_v7 = vld [vmem:[%s7181_s3 + $0x290] sm:$0xff]  ;;  %v4331_v9 = vld [vmem:[%s7181_s3 + $0x288] sm:$0xff] }
 0x2f1   : > { %4491 = vmatprep.subr.mxu1 %v4337_v60  ;;  %4421 = vmatpush1.msra.mxu0 %v4272_v63  ;;  %v4266_v11 = vld [vmem:[%s7181_s3 + $0x80] sm:$0xff]  ;;  %v4265_v25 = vld [vmem:[%s7181_s3 + $0x78] sm:$0xff]  ;;  %v4264_v12 = vld [vmem:[%s7181_s3 + $0x70] sm:$0xff] }
 0x2f2   : > { %4492 = vmatpush1.msra.mxu1 %v4336_v0  ;;  %4422 = vmatprep.subr.mxu0 %v4271_v1  ;;  %v4330_v19 = vld [vmem:[%s7181_s3 + $0x280] sm:$0xff]  ;;  %v4329_v33 = vld [vmem:[%s7181_s3 + $0x278] sm:$0xff]  ;;  %v4328_v13 = vld [vmem:[%s7181_s3 + $0x270] sm:$0xff] }
 0x2f3   : > { %4493 = vmatprep.subr.mxu1 %v4335_v3  ;;  %4423 = vmatpush1.msra.mxu0 %v4270_v15  ;;  %v4263_v14 = vld [vmem:[%s7181_s3 + $0x68] sm:$0xff]  ;;  %v4262_v51 = vld [vmem:[%s7181_s3 + $0x60] sm:$0xff]  ;;  %v4261_v18 = vld [vmem:[%s7181_s3 + $0x58] sm:$0xff]  ;;  %v7008_v15 = vsub.s32 0, %v6130_v45 }
 0x2f4   : > { %4494 = vmatpush1.msra.mxu1 %v4334_v20  ;;  %4424 = vmatprep.subr.mxu0 %v4269_v26  ;;  %v4327_v17 = vld [vmem:[%s7181_s3 + $0x268] sm:$0xff]  ;;  %v4326_v42 = vld [vmem:[%s7181_s3 + $0x260] sm:$0xff]  ;;  %v4325_v21 = vld [vmem:[%s7181_s3 + $0x258] sm:$0xff]  ;;  %v7011_v20 = vsub.s32 1, %v6130_v45  ;;  %v4222_v26 = vsub.s32 2, %v6130_v45 }
 0x2f5   : > { %4495 = vmatprep.subr.mxu1 %v4333_v6  ;;  %4425 = vmatpush1.msra.mxu0 %v4268_v10  ;;  %v4260_v22 = vld [vmem:[%s7181_s3 + $0x50] sm:$0xff]  ;;  %v4259_v24 = vld [vmem:[%s7181_s3 + $0x48] sm:$0xff]  ;;  %v4258_v29 = vld [vmem:[%s7181_s3 + $0x40] sm:$0xff] }
 0x2f6   : > { %4496 = vmatpush1.msra.mxu1 %v4332_v7  ;;  %4426 = vmatprep.subr.mxu0 %v4267_v16  ;;  %v4324_v23 = vld [vmem:[%s7181_s3 + $0x250] sm:$0xff]  ;;  %v4323_v27 = vld [vmem:[%s7181_s3 + $0x248] sm:$0xff]  ;;  %v4322_v28 = vld [vmem:[%s7181_s3 + $0x240] sm:$0xff]  ;;  %v4226_v7 = vsub.s32 3, %v6130_v45 }
 0x2f7   : > { %4497 = vmatprep.subr.mxu1 %v4331_v9  ;;  %4427 = vmatpush1.msra.mxu0 %v4266_v11  ;;  %v4257_v32 = vld [vmem:[%s7181_s3 + $0x38] sm:$0xff]  ;;  %v4256_v8 = vld [vmem:[%s7181_s3 + $0x30] sm:$0xff]  ;;  %v4255_v38 = vld [vmem:[%s7181_s3 + $0x28] sm:$0xff] }
 0x2f8   : > { %4498 = vmatpush1.msra.mxu1 %v4330_v19  ;;  %4428 = vmatprep.subr.mxu0 %v4265_v25  ;;  %v4321_v4 = vld [vmem:[%s7181_s3 + $0x238] sm:$0xff]  ;;  %v4320_v35 = vld [vmem:[%s7181_s3 + $0x230] sm:$0xff]  ;;  %v4319_v43 = vld [vmem:[%s7181_s3 + $0x228] sm:$0xff] }
 0x2f9   : > { %4499 = vmatprep.subr.mxu1 %v4329_v33  ;;  %4429 = vmatpush1.msra.mxu0 %v4264_v12  ;;  %v4254_v44 = vld [vmem:[%s7181_s3 + $0x20] sm:$0xff]  ;;  %v4253_v39 = vld [vmem:[%s7181_s3 + $0x18] sm:$0xff]  ;;  %v4252_v41 = vld [vmem:[%s7181_s3 + $0x10] sm:$0xff] }
 0x2fa   : > { %4500 = vmatpush1.msra.mxu1 %v4328_v13  ;;  %4430 = vmatprep.subr.mxu0 %v4263_v14  ;;  %v4318_v5 = vld [vmem:[%s7181_s3 + $0x220] sm:$0xff]  ;;  %v4317_v40 = vld [vmem:[%s7181_s3 + $0x218] sm:$0xff]  ;;  %v4316_v34 = vld [vmem:[%s7181_s3 + $0x210] sm:$0xff] }
 0x2fb   : > { %4501 = vmatprep.subr.mxu1 %v4327_v17  ;;  %4431 = vmatpush1.msra.mxu0 %v4262_v51  ;;  %v4251_v62 = vld [vmem:[%s7181_s3 + $0x8] sm:$0xff]  ;;  %v4250_v46 = vld [vmem:[%s7181_s3] sm:$0xff]  ;;  %v4313_v49 = vld [vmem:[%s7181_s3 + $0x1f8] sm:$0xff] }
 0x2fc   : > { %4502 = vmatpush1.msra.mxu1 %v4326_v42  ;;  %4432 = vmatprep.subr.mxu0 %v4261_v18  ;;  %v4315_v2 = vld [vmem:[%s7181_s3 + $0x208] sm:$0xff]  ;;  %v4314_v47 = vld [vmem:[%s7181_s3 + $0x200] sm:$0xff]  ;;  %v4377_v52 = vld [vmem:[%s7181_s3 + $0x3f8] sm:$0xff] }
 0x2fd   : > { %4503 = vmatprep.subr.mxu1 %v4325_v21  ;;  %4433 = vmatpush1.msra.mxu0 %v4260_v22  ;;  %v4312_v31 = vld [vmem:[%s7181_s3 + $0x1f0] sm:$0xff]  ;;  %v4311_v50 = vld [vmem:[%s7181_s3 + $0x1e8] sm:$0xff]  ;;  %v4310_v30 = vld [vmem:[%s7181_s3 + $0x1e0] sm:$0xff] }
 0x2fe   : > { %4504 = vmatpush1.msra.mxu1 %v4324_v23  ;;  %4434 = vmatprep.subr.mxu0 %v4259_v24  ;;  %v4376_v48 = vld [vmem:[%s7181_s3 + $0x3f0] sm:$0xff]  ;;  %v4375_v57 = vld [vmem:[%s7181_s3 + $0x3e8] sm:$0xff]  ;;  %v4374_v53 = vld [vmem:[%s7181_s3 + $0x3e0] sm:$0xff] }
 0x2ff   : > { %4505 = vmatprep.subr.mxu1 %v4323_v27  ;;  %4435 = vmatpush1.msra.mxu0 %v4258_v29  ;;  %v4309_v54 = vld [vmem:[%s7181_s3 + $0x1d8] sm:$0xff]  ;;  %v4308_v37 = vld [vmem:[%s7181_s3 + $0x1d0] sm:$0xff]  ;;  %v4307_v61 = vld [vmem:[%s7181_s3 + $0x1c8] sm:$0xff] }
 0x300   : > { %4506 = vmatpush1.msra.mxu1 %v4322_v28  ;;  %4436 = vmatprep.subr.mxu0 %v4257_v32  ;;  %v4373_v55 = vld [vmem:[%s7181_s3 + $0x3d8] sm:$0xff]  ;;  %v4372_v56 = vld [vmem:[%s7181_s3 + $0x3d0] sm:$0xff]  ;;  %v4371_v58 = vld [vmem:[%s7181_s3 + $0x3c8] sm:$0xff] }
 0x301   : > { %4507 = vmatprep.subr.mxu1 %v4321_v4  ;;  %4437 = vmatpush1.msra.mxu0 %v4256_v8  ;;  %v4306_v59 = vld [vmem:[%s7181_s3 + $0x1c0] sm:$0xff]  ;;  %v4305_v63 = vld [vmem:[%s7181_s3 + $0x1b8] sm:$0xff]  ;;  %v4304_v1 = vld [vmem:[%s7181_s3 + $0x1b0] sm:$0xff] }
 0x302   : > { %4508 = vmatpush1.msra.mxu1 %v4320_v35  ;;  %4438 = vmatprep.subr.mxu0 %v4255_v38  ;;  %v4370_v60 = vld [vmem:[%s7181_s3 + $0x3c0] sm:$0xff]  ;;  %v4369_v0 = vld [vmem:[%s7181_s3 + $0x3b8] sm:$0xff]  ;;  %v4368_v3 = vld [vmem:[%s7181_s3 + $0x3b0] sm:$0xff] }
 0x303   : > { %4509 = vmatprep.subr.mxu1 %v4319_v43  ;;  %4439 = vmatpush1.msra.mxu0 %v4254_v44  ;;  %v4303_v6 = vld [vmem:[%s7181_s3 + $0x1a8] sm:$0xff]  ;;  %v4302_v16 = vld [vmem:[%s7181_s3 + $0x1a0] sm:$0xff]  ;;  %v4301_v11 = vld [vmem:[%s7181_s3 + $0x198] sm:$0xff] }
 0x304   : > { %4510 = vmatpush1.msra.mxu1 %v4318_v5  ;;  %4440 = vmatprep.subr.mxu0 %v4253_v39  ;;  %v4367_v10 = vld [vmem:[%s7181_s3 + $0x3a8] sm:$0xff]  ;;  %v4366_v9 = vld [vmem:[%s7181_s3 + $0x3a0] sm:$0xff]  ;;  %v4365_v45 = vld [vmem:[%s7181_s3 + $0x398] sm:$0xff] }
 0x305   : > { %4511 = vmatprep.subr.mxu1 %v4317_v40  ;;  %4441 = vmatpush1.msra.mxu0 %v4252_v41  ;;  %v4210_v19 = vld [vmem:[%s7180_s2] sm:$0xf]  ;;  %v4300_v25 = vld [vmem:[%s7181_s3 + $0x190] sm:$0xff]  ;;  %v4299_v17 = vld [vmem:[%s7181_s3 + $0x188] sm:$0xff] }
 0x306   : > { %4512 = vmatpush1.msra.mxu1 %v4316_v34  ;;  %4442 = vmatprep.subr.mxu0 %v4251_v62  ;;  %v4364_v33 = vld [vmem:[%s7181_s3 + $0x390] sm:$0xff]  ;;  %v4215_v12 = vrot.slane %v4210_v19, %v7008_v15  ;;  %v4219_v13 = vrot.slane %v4210_v19, %v7011_v20  ;;  %v4223_v14 = vrot.slane %v4210_v19, %v4222_v26  ;;  %v4363_v51 = vld [vmem:[%s7181_s3 + $0x388] sm:$0xff]  ;;  %v4298_v18 = vld [vmem:[%s7181_s3 + $0x180] sm:$0xff] }
 0x307   : > { %4513 = vmatprep.subr.mxu1 %v4315_v2  ;;  %4443 = vmatpush1.msra.mxu0 %v4250_v46  ;;  %v4227_v42 = vrot.slane %v4210_v19, %v4226_v7  ;;  %v4362_v21 = vld [vmem:[%s7181_s3 + $0x380] sm:$0xff]  ;;  %v4297_v23 = vld [vmem:[%s7181_s3 + $0x178] sm:$0xff]  ;;  %v4296_v29 = vld [vmem:[%s7181_s3 + $0x170] sm:$0xff] }
 0x308   : > { %4514 = vmatpush1.msra.mxu1 %v4314_v47  ;;  %4444 = vmatprep.subr.mxu0 %v4313_v49  ;;  %v4228_v22 = vcombine.low %v4215_v12, %v4219_v13  ;;  %v4361_v24 = vld [vmem:[%s7181_s3 + $0x378] sm:$0xff]  ;;  %v4360_v28 = vld [vmem:[%s7181_s3 + $0x370] sm:$0xff]  ;;  %v4295_v4 = vld [vmem:[%s7181_s3 + $0x168] sm:$0xff] }
 0x309   : > { %4515 = vmatprep.subr.mxu1 %v4377_v52  ;;  %4445 = vmatpush2.msra.mxu0 %v4312_v31  ;;  %v4229_v27 = vcombine.low %v4223_v14, %v4227_v42  ;;  %v4359_v8 = vld [vmem:[%s7181_s3 + $0x368] sm:$0xff]  ;;  %v4294_v38 = vld [vmem:[%s7181_s3 + $0x160] sm:$0xff]  ;;  %v4293_v5 = vld [vmem:[%s7181_s3 + $0x158] sm:$0xff] }
 0x30a   : > { %4516 = vmatpush2.msra.mxu1 %v4376_v48  ;;  %4446 = vmatprep.subr.mxu0 %v4311_v50  ;;  %v4236_v32 = vrot.slane %v4228_v22, %v6747_v36  ;;  %v4358_v43 = vld [vmem:[%s7181_s3 + $0x360] sm:$0xff]  ;;  %v4357_v39 = vld [vmem:[%s7181_s3 + $0x358] sm:$0xff]  ;;  %v4292_v41 = vld [vmem:[%s7181_s3 + $0x150] sm:$0xff] }
 0x30b   : > { %4517 = vmatprep.subr.mxu1 %v4375_v57  ;;  %4447 = vmatpush2.msra.mxu0 %v4310_v30  ;;  %v4243_v35 = vrot.slane %v4229_v27, %v6747_v36  ;;  %v4209_v44 = vld [vmem:[#allocation2] sm:$0xff]  ;;  %v4356_v34 = vld [vmem:[%s7181_s3 + $0x350] sm:$0xff]  ;;  %v4291_v62 = vld [vmem:[%s7181_s3 + $0x148] sm:$0xff] }
 0x30c   : > { %4518 = vmatpush2.msra.mxu1 %v4374_v53  ;;  %4448 = vmatprep.subr.mxu0 %v4309_v54  ;;  %v4355_v2 = vld [vmem:[%s7181_s3 + $0x348] sm:$0xff]  ;;  %v4290_v47 = vld [vmem:[%s7181_s3 + $0x140] sm:$0xff]  ;;  %v4289_v52 = vld [vmem:[%s7181_s3 + $0x138] sm:$0xff] }
 0x30d   : > { %4519 = vmatprep.subr.mxu1 %v4373_v55  ;;  %4449 = vmatpush2.msra.mxu0 %v4308_v37  ;;  %v4244_v40 = vcombine.low %v4236_v32, %v4243_v35  ;;  %v4354_v49 = vld [vmem:[%s7181_s3 + $0x340] sm:$0xff]  ;;  %v4353_v31 = vld [vmem:[%s7181_s3 + $0x338] sm:$0xff]  ;;  %v4288_v50 = vld [vmem:[%s7181_s3 + $0x130] sm:$0xff] }
 0x30e   : > { %4520 = vmatpush2.msra.mxu1 %v4372_v56  ;;  %4450 = vmatprep.subr.mxu0 %v4307_v61  ;;  %v4352_v57 = vld [vmem:[%s7181_s3 + $0x330] sm:$0xff]  ;;  %v4287_v30 = vld [vmem:[%s7181_s3 + $0x128] sm:$0xff]  ;;  %v4286_v55 = vld [vmem:[%s7181_s3 + $0x120] sm:$0xff] }
 0x30f   : > { %4521 = vmatprep.subr.mxu1 %v4371_v58  ;;  %4451 = vmatpush2.msra.mxu0 %v4306_v59  ;;  %v4246_v46 = vadd.f32 %v4244_v40, %v4209_v44  ;;  %v4351_v53 = vld [vmem:[%s7181_s3 + $0x328] sm:$0xff]  ;;  %v4350_v37 = vld [vmem:[%s7181_s3 + $0x320] sm:$0xff]  ;;  %v4285_v58 = vld [vmem:[%s7181_s3 + $0x118] sm:$0xff] }
 0x310   : > { %4522 = vmatpush2.msra.mxu1 %v4370_v60  ;;  %4452 = vmatprep.subr.mxu0 %v4305_v63  ;;  %v4349_v59 = vld [vmem:[%s7181_s3 + $0x318] sm:$0xff]  ;;  %v4284_v60 = vld [vmem:[%s7181_s3 + $0x110] sm:$0xff]  ;;  %v4378_v7 = vld [vmem:[%s7182_s4] sm:$0x3] }
 0x311   : > { %4523 = vmatprep.subr.mxu1 %v4369_v0  ;;  %4453 = vmatpush2.msra.mxu0 %v4304_v1  ;;  %vm4247_vm0 = vcmp.gt.f32.partialorder %v4246_v46, 0.0  ;;  %v4248_v48 = vmul.f32 0.2, %v4246_v46  ;;  %v4348_v63 = vld [vmem:[%s7181_s3 + $0x310] sm:$0xff]  ;;  %v4283_v1 = vld [vmem:[%s7181_s3 + $0x108] sm:$0xff] }
 0x312   : > { %4524 = vmatpush2.msra.mxu1 %v4368_v3  ;;  %4454 = vmatprep.subr.mxu0 %v4303_v6  ;;  %v4347_v3 = vld [vmem:[%s7181_s3 + $0x308] sm:$0xff]  ;;  %v4282_v6 = vld [vmem:[%s7181_s3 + $0x100] sm:$0xff] }
 0x313   : > { %4525 = vmatprep.subr.mxu1 %v4367_v10  ;;  %4455 = vmatpush2.msra.mxu0 %v4302_v16  ;;  %v4249_v54 = vsel %vm4247_vm0, %v4246_v46, %v4248_v48  ;;  %v4383_v16 = vrot.slane %v4378_v7, %v7008_v15 }
 0x314   : > { %4526 = vmatpush2.msra.mxu1 %v4366_v9  ;;  %4456 = vmatprep.subr.mxu0 %v4301_v11  ;;  %v4398_v56 = vrot.slane %v4249_v54, %v6747_v36  ;;  %v4391_v61 = vcombine.high %v4249_v54, %v4249_v54  ;;  %v4387_v9 = vrot.slane %v4378_v7, %v7011_v20 }
 0x315   : > { %4527 = vmatprep.subr.mxu1 %v4365_v45  ;;  %4457 = vmatpush2.msra.mxu0 %v4300_v25  ;;  %v4560_v25 = vld [vmem:[%s7183_s5] sm:$0x3] }
 0x316   : > { %4528 = vmatpush2.msra.mxu1 %v4364_v33  ;;  %4458 = vmatprep.subr.mxu0 %v4299_v17  ;;  %v4405_v0 = vrot.slane %v4391_v61, %v6747_v36  ;;  %v4406_v26 = vcombine.high %v4398_v56, %v4398_v56  ;;  %v4346_v36 = vld [vmem:[%s7181_s3 + $0x300] sm:$0xff]  ;;  %v4565_v17 = vrot.slane %v4560_v25, %v7008_v15 }
 0x317   : > { %4529 = vmatprep.subr.mxu1 %v4363_v51  ;;  %4459 = vmatpush2.msra.mxu0 %v4298_v18  ;;  %v4569_v18 = vrot.slane %v4560_v25, %v7011_v20 }
 0x318   : > { %4530 = vmatpush2.msra.mxu1 %v4362_v21  ;;  %4460 = vmatprep.subr.mxu0 %v4297_v23  ;;  %v4407_v10 = vcombine.high %v4405_v0, %v4405_v0 }
 0x319   : > { %4531 = vmatprep.subr.mxu1 %v4361_v24  ;;  %4461 = vmatpush2.msra.mxu0 %v4296_v29 }
 0x31a   : > { %4532 = vmatpush2.msra.mxu1 %v4360_v28  ;;  %4462 = vmatprep.subr.mxu0 %v4295_v4  ;;  %v5186_v4 = vld [vmem:[#allocation3] ss:$0 sm:$0xff] }
 0x31b   : > { %4533 = vmatprep.subr.mxu1 %v4359_v8  ;;  %4463 = vmatpush2.msra.mxu0 %v4294_v38 }
 0x31c   : > { %4534 = vmatpush2.msra.mxu1 %v4358_v43  ;;  %4464 = vmatprep.subr.mxu0 %v4293_v5 }
 0x31d   : > { %4535 = vmatprep.subr.mxu1 %v4357_v39  ;;  %4465 = vmatpush2.msra.mxu0 %v4292_v41 }
 0x31e   : > { %4536 = vmatpush2.msra.mxu1 %v4356_v34  ;;  %4466 = vmatprep.subr.mxu0 %v4291_v62 }
 0x31f   : > { %4537 = vmatprep.subr.mxu1 %v4355_v2  ;;  %4467 = vmatpush2.msra.mxu0 %v4290_v47 }
 0x320   : > { %4538 = vmatpush2.msra.mxu1 %v4354_v49  ;;  %4468 = vmatprep.subr.mxu0 %v4289_v52 }
 0x321   : > { %4539 = vmatprep.subr.mxu1 %v4353_v31  ;;  %4469 = vmatpush2.msra.mxu0 %v4288_v50 }
 0x322   : > { %4540 = vmatpush2.msra.mxu1 %v4352_v57  ;;  %4470 = vmatprep.subr.mxu0 %v4287_v30 }
 0x323   : > { %4541 = vmatprep.subr.mxu1 %v4351_v53  ;;  %4471 = vmatpush2.msra.mxu0 %v4286_v55 }
 0x324   : > { %4542 = vmatpush2.msra.mxu1 %v4350_v37  ;;  %4472 = vmatprep.subr.mxu0 %v4285_v58 }
 0x325   : > { %4543 = vmatprep.subr.mxu1 %v4349_v59  ;;  %4473 = vmatpush2.msra.mxu0 %v4284_v60 }
 0x326   : > { %4544 = vmatpush2.msra.mxu1 %v4348_v63  ;;  %4474 = vmatprep.subr.mxu0 %v4283_v1 }
 0x327   : > { %4545 = vmatprep.subr.mxu1 %v4347_v3  ;;  %4475 = vmatpush2.msra.mxu0 %v4282_v6 }
 0x328   : > { %4476 = vmatprep.mubr.f32.mxu0 %v4406_v26  ;;  %4546 = vmatpush2.msra.mxu1 %v4346_v36 }
 0x329   : > { %4547 = vmatprep.mubr.f32.mxu1 %v4407_v10  ;;  %4477 = vmatmul.mubr.f32.vlgmr.msra.gmra.mxu0 %v4398_v56 }
 0x32a   : > { %4548 = vmatmul.mubr.f32.vlgmr.msra.gmra.mxu1 %v4405_v0 }
 0x3e9   : > { %v4478_v11 = vpop.f32.mrf.mxu0 }
 0x3ea   : > { %v4549_v45 = vpop.f32.mrf.mxu1  ;;  %v4479_v19 = vadd.f32 %v4478_v11, %v4383_v16 }
 0x3eb   : > { %v4480_v33 = vpop.f32.mrf.mxu0 }
 0x3ec   : > { %v4550_v12 = vadd.f32 %v4549_v45, %v4479_v19  ;;  %v4481_v13 = vadd.f32 %v4480_v33, %v4387_v9  ;;  %v4551_v14 = vpop.f32.mrf.mxu1 }
 0x3ee   : > { %vm4554_vm1 = vcmp.gt.f32.partialorder %v4550_v12, 0.0  ;;  %v4556_v51 = vmul.f32 0.2, %v4550_v12  ;;  %v4552_v42 = vadd.f32 %v4551_v14, %v4481_v13 }
 0x3f0   : > { %vm4555_vm2 = vcmp.gt.f32.partialorder %v4552_v42, 0.0  ;;  %v4557_v21 = vmul.f32 0.2, %v4552_v42  ;;  %v4558_v22 = vsel %vm4554_vm1, %v4550_v12, %v4556_v51 }
 0x3f1   : > { %v4572_v23 = vmul.f32 %v4565_v17, %v4558_v22 }
 0x3f2   : > { %v4559_v24 = vsel %vm4555_vm2, %v4552_v42, %v4557_v21 }
 0x3f3   : > { %v4573_v27 = vmul.f32 %v4569_v18, %v4559_v24  ;;  %v4575_v29 = vsel %vm4574_vm3, %v4572_v23, 0.0 }
 0x3f5   : > { %v4576_v28 = vsel %vm4574_vm3, %v4573_v27, 0.0 }
 0x3f6   : > { %v4577_v32 = vadd.f32 %v4576_v28, %v4575_v29 }
 0x3f8   : > { %4578 = vadd.xlane.f32.xlu0 %v4577_v32 }
 0x481   : > { %v4579_v8 = vpop.xlane.xlu0 %4578 }
 0x482   : > { %v4587_v15 = vadd.f32 %v5186_v4, %v4579_v8 }
 0x484   : > { %4589 = vst.msk [vmem:[%s7185_s7] sm:$0x3] %vm4588_vm4, %v4587_v15 }
 0x485 PF: > { %s19_s28 = sadd.s32 1, %s6010_s28   ;;  %s7186_s26 = smov %s6006_s27 }
 0x486   : > { %p16_p8 = scmp.ge.s32.totalorder %s19_s28, 8   ;;  %s7187_s27 = smov %s7189_s6 }
 0x488   :  { %18 = sbr.rel (!%p16_p8) target bundleno = 3 (0x3), region = 89 }

</bundles_post_ra>
